<compile_context>
chip_gen: v5e
topology: v5e:2x2
jax: 0.10.0
libtpu: 0.0.40
codegen_flags: <defaults>
</compile_context>

<pallas_src>
import functools

import jax
import jax.numpy as jnp
from jax import lax
from jax.experimental import pallas as pl
from jax.experimental.pallas import tpu as pltpu


# ----------------------------------------------------------------------------
# Kernel
# ----------------------------------------------------------------------------
def _prop_kernel(idx_ref, cs_ref, src_ref, wt_ref, b_ref, o_ref, acc_ref,
                 *, cnt_dtype, fuse_update):
    # idx_ref: (TR, 2K) int32 — global gather indices into slab rows, -1 = padding
    # cs_ref:  (TR, D)  compute dtype — current_state rows for this row tile
    # src_ref: (ST, D)  compute dtype — slab tile [current_state ; edges_m ; 0-pad]
    # wt_ref:  (2D, D)  compute dtype — update weight, pre-transposed (W.T)
    # b_ref:   (1, D)   f32
    # o_ref:   (TR, D)  out dtype
    # acc_ref: (TR, D)  f32 scratch — agg accumulator across source tiles
    k = pl.program_id(1)
    tr, d = o_ref.shape
    st = src_ref.shape[0]
    k2 = idx_ref.shape[1]

    @pl.when(k == 0)
    def _():
        acc_ref[...] = jnp.zeros_like(acc_ref)

    # Local one-hot count matrix for this source tile:
    #   C[r, c] = #{ j : idx[r, j] == k*st + c }   (exact small integers)
    idx_local = idx_ref[...] - k * st                            # (tr, 2K) int32
    col_ids = lax.broadcasted_iota(jnp.int32, (tr, st), 1)       # (tr, st)
    cnt = jnp.zeros((tr, st), cnt_dtype)
    for j in range(k2):                                          # 2K: small & static
        cnt += (idx_local[:, j:j + 1] == col_ids).astype(cnt_dtype)

    # Gather + mask + K-reduction as one MXU matmul, accumulated over src tiles.
    acc_ref[...] += jnp.dot(cnt.astype(src_ref.dtype), src_ref[...],
                            preferred_element_type=jnp.float32)

    @pl.when(k == pl.num_programs(1) - 1)
    def _():
        agg = acc_ref[...]                                       # (tr, d) f32
        cs = cs_ref[...]                                         # (tr, d)
        if fuse_update:
            # v6e/v7x: one 2D-deep contraction matches the 256-deep MXU.
            x = jnp.concatenate([agg.astype(wt_ref.dtype), cs], axis=-1)
            y = jnp.dot(x, wt_ref[...], preferred_element_type=jnp.float32)
        else:
            # v5e (128-deep MXU): two D-deep matmuls, no (tr, 2d) concat tile.
            y = (jnp.dot(agg.astype(wt_ref.dtype), wt_ref[:d, :],
                         preferred_element_type=jnp.float32)
                 + jnp.dot(cs, wt_ref[d:, :],
                           preferred_element_type=jnp.float32))
        o_ref[...] = jnp.tanh(y + b_ref[...]).astype(o_ref.dtype)


# ----------------------------------------------------------------------------
# Per-generation policy + tile selection
# ----------------------------------------------------------------------------
def _chip_policy():
    """TPU-generation policy: TC count, VMEM limit/budget, unit features."""
    try:
        kind = jax.devices()[0].device_kind.lower()
    except Exception:  # pragma: no cover - backend probing oddities
        kind = ""
    if "v7" in kind:            # 2 TCs/chip, 64 MiB VMEM/TC, bf16 VALU, 256-deep MXU
        return dict(cores=2, vmem_limit=48 << 20, vmem_budget=36 << 20,
                    bf16_valu=True, deep_mxu=True)
    if "v6" in kind:            # 1 TC, 128 MiB VMEM, bf16 VALU, 256-deep MXU
        return dict(cores=1, vmem_limit=96 << 20, vmem_budget=72 << 20,
                    bf16_valu=True, deep_mxu=True)
    if "v5 lite" in kind or "v5e" in kind or "v5litepod" in kind:
        # 1 TC, 128 MiB VMEM (16 MiB default scoped), no bf16 VALU, 128-deep MXU
        return dict(cores=1, vmem_limit=96 << 20, vmem_budget=72 << 20,
                    bf16_valu=False, deep_mxu=False)
    # Unknown / older part: stay within default scoped VMEM, conservative flags.
    return dict(cores=1, vmem_limit=None, vmem_budget=10 << 20,
                bf16_valu=False, deep_mxu=False)


def _pick_s_tile(s_pad, cap=2048):
    """Largest multiple of 128 that divides s_pad and is <= cap."""
    t = min(cap, s_pad)
    t -= t % 128
    while t > 128 and s_pad % t != 0:
        t -= 128
    return max(t, 128)


def _max_rows_for_budget(budget, s_tile, D, K, cnt_bytes, cdt_bytes, out_bytes,
                         resident_bufs=1):
    """Cap the row tile so the per-step VMEM footprint stays under `budget`."""
    fixed = (2 * s_tile * D * cdt_bytes                 # src tile, double-buffered
             + resident_bufs * 2 * D * D * cdt_bytes    # fused weight
             + resident_bufs * 8 * 128 * 4)             # bias (padded tile)
    per_row = (2 * max(2 * K, 128) * 4                  # idx tile (lane-padded), x2
               + 2 * D * cdt_bytes                      # current_state tile, x2
               + 2 * D * out_bytes                      # output tile, x2
               + D * 4                                  # f32 accumulator scratch
               + s_tile * cnt_bytes                     # count-matrix intermediate
               + 2 * D * cdt_bytes                      # concat / matmul staging
               + D * 4)                                 # misc f32 temporaries
    return max(8, (budget - fixed) // per_row)


def _pick_row_tile(R, num_cores, max_rows):
    if R % 8 != 0:
        return R                                  # single full block (== full dim)
    cands = [t for t in range(8, min(R, 1024) + 1, 8) if R % t == 0]
    if not cands:
        return R
    cands.sort(reverse=True)                      # largest first
    fitting = [t for t in cands if t <= max_rows] or [cands[-1]]
    if num_cores <= 1:
        return fitting[0]                         # 1 TC: one big block is best
    # Multi-TC part: prefer >= 2 grid steps per core so DMA/writeback can pipeline.
    for min_steps in (2 * num_cores, num_cores):
        for t in fitting:
            if R // t >= min_steps:
                return t
    return fitting[-1]


def _resident_spec(shape, single_buffer):
    """Constant-index BlockSpec; single-buffered when supported (block never changes)."""
    index_map = lambda i, k: (0,) * len(shape)
    if single_buffer:
        return pl.BlockSpec(shape, index_map, pipeline_mode=pl.Buffered(1))
    return pl.BlockSpec(shape, index_map)


# ----------------------------------------------------------------------------
# Wrapper
# ----------------------------------------------------------------------------
def propagation_model(current_state, edges_m, A_nodes, A_edges, W, b, *,
                      row_tile=None, s_tile=None,
                      compute_dtype=jnp.bfloat16, out_dtype=jnp.float32):
    """Pallas TPU forward pass of PropagationModel.

    NOTE: embeddings/weights are cast to `compute_dtype` (default bf16) for DMA
    and the MXU; accumulation, bias add and tanh stay in f32.  Pass
    compute_dtype=jnp.float32 for a full-precision path, and out_dtype=bf16 to
    halve the output writeback if downstream consumers accept it.
    """
    B, N, D = current_state.shape
    E = edges_m.shape[1]
    K = A_nodes.shape[-1]
    R = B * N                                     # total output rows

    policy = _chip_policy()

    # ---- cheap wrapper glue: int index math only (no gather, no mask tensors) ----
    # Global row indices into the [current_state ; edges_m] slab; index 0 means
    # "padding" in the original module -> mapped to -1 (matches nothing).
    boff_n = (jnp.arange(B, dtype=jnp.int32) * N)[:, None, None]
    boff_e = (jnp.arange(B, dtype=jnp.int32) * E)[:, None, None]
    gn = jnp.where(A_nodes != 0, A_nodes.astype(jnp.int32) + boff_n, -1)
    ge = jnp.where(A_edges != 0, A_edges.astype(jnp.int32) + boff_e + R, -1)
    idx = jnp.concatenate([gn, ge], axis=-1).reshape(R, 2 * K).astype(jnp.int32)

    cs = current_state.reshape(R, D).astype(compute_dtype)
    src = jnp.concatenate([current_state.reshape(R, D),
                           edges_m.reshape(B * E, D)], axis=0)
    S = src.shape[0]
    s_pad = -(-S // 128) * 128                    # lane-dense count build + aligned MXU
    if s_pad != S:
        src = jnp.pad(src, ((0, s_pad - S), (0, 0)))
    src = src.astype(compute_dtype)

    wt = W.T.astype(compute_dtype)                # (2D, D): rows [0,D)->agg, [D,2D)->cs
    b2 = b.reshape(1, D).astype(jnp.float32)

    # ---- per-generation count dtype / matmul shape / tiles ----
    if policy["bf16_valu"]:
        assert 2 * K <= 256, "bf16 count accumulation is exact only while 2K <= 256"
        cnt_dtype = jnp.bfloat16
    else:
        cnt_dtype = jnp.float32                   # v5e/older: no bf16 VALU

    cnt_bytes = jnp.dtype(cnt_dtype).itemsize
    cdt_bytes = jnp.dtype(compute_dtype).itemsize
    out_bytes = jnp.dtype(out_dtype).itemsize

    if s_tile is None:
        s_tile = _pick_s_tile(s_pad)
    assert s_pad % s_tile == 0 and s_tile % 128 == 0

    if row_tile is None:
        max_rows = _max_rows_for_budget(policy["vmem_budget"], s_tile, D, K,
                                        cnt_bytes, cdt_bytes, out_bytes)
        row_tile = _pick_row_tile(R, policy["cores"], max_rows)
    assert R % row_tile == 0

    cp_kwargs = dict(dimension_semantics=("parallel", "arbitrary"))
    if policy["vmem_limit"] is not None:
        cp_kwargs["vmem_limit_bytes"] = policy["vmem_limit"]
    cparams = pltpu.CompilerParams(**cp_kwargs)

    kernel = functools.partial(_prop_kernel, cnt_dtype=cnt_dtype,
                               fuse_update=policy["deep_mxu"])

    def _call(single_buffer_residents):
        grid_spec = pltpu.PrefetchScalarGridSpec(
            num_scalar_prefetch=0,
            grid=(R // row_tile, s_pad // s_tile),
            in_specs=[
                # (row_tile, 2K) int32 is lane-sparse (pads to 128 lanes); fine at K=4.
                pl.BlockSpec((row_tile, 2 * K), lambda i, k: (i, 0)),   # gather indices
                pl.BlockSpec((row_tile, D), lambda i, k: (i, 0)),       # current_state rows
                pl.BlockSpec((s_tile, D), lambda i, k: (k, 0)),         # source slab tile
                _resident_spec((2 * D, D), single_buffer_residents),    # fused W.T
                _resident_spec((1, D), single_buffer_residents),        # bias
            ],
            out_specs=pl.BlockSpec((row_tile, D), lambda i, k: (i, 0)),
            scratch_shapes=[pltpu.VMEM((row_tile, D), jnp.float32)],    # agg accumulator
        )
        return pl.pallas_call(
            kernel,
            out_shape=jax.ShapeDtypeStruct((R, D), out_dtype),
            grid_spec=grid_spec,
            compiler_params=cparams,
        )(idx, cs, src, wt, b2)

    try:
        out = _call(True)
    except Exception:
        # pipeline_mode=pl.Buffered(1) unsupported on this jax — default buffering.
        out = _call(False)

    return out.reshape(B, N, D)


# ----------------------------------------------------------------------------
# Pure-JAX f32 replica of the PyTorch forward pass (for testing)
# ----------------------------------------------------------------------------
def reference(current_state, edges_m, A_nodes, A_edges, W, b):
    B, N, D = current_state.shape
    batch_idx = jnp.arange(B)[:, None, None]
    nodes = current_state[batch_idx, A_nodes, :]
    edges = edges_m[batch_idx, A_edges, :]
    nmask = (A_nodes != 0).astype(jnp.float32)[..., None]
    emask = (A_edges != 0).astype(jnp.float32)[..., None]
    agg = jnp.sum(nodes * nmask + edges * emask, axis=2)
    x = jnp.concatenate([agg, current_state], axis=-1)
    return jnp.tanh(x @ W.T + b)


if __name__ == "__main__":
    def make_case(key, B, N, E, K, D):
        k1, k2, k3, k4, k5, k6 = jax.random.split(key, 6)
        current_state = jax.random.normal(k1, (B, N, D), jnp.float32)
        edges_m = jax.random.normal(k2, (B, E, D), jnp.float32)
        A_nodes = jax.random.randint(k3, (B, N, K), 0, N, dtype=jnp.int32)
        A_edges = jax.random.randint(k4, (B, N, K), 0, E, dtype=jnp.int32)
        bound = 1.0 / float(jnp.sqrt(2.0 * D))      # PyTorch Linear init scale
        W = jax.random.uniform(k5, (D, 2 * D), jnp.float32, -bound, bound)
        bvec = jax.random.uniform(k6, (D,), jnp.float32, -bound, bound)
        return current_state, edges_m, A_nodes, A_edges, W, bvec

    def check(out, args):
        cs_, em_, an_, ae_, W_, b_ = args
        # Kernel-math check vs. bf16-quantized reference (same quantized operands).
        q = lambda a: a.astype(jnp.bfloat16).astype(jnp.float32)
        ref_q = reference(q(cs_), q(em_), an_, ae_, q(W_), b_)
        assert jnp.allclose(out, ref_q, atol=2e-2, rtol=2e-2), "mismatch vs bf16 ref"
        # Full-precision reference: only bounded quantization error remains.
        ref = reference(cs_, em_, an_, ae_, W_, b_)
        assert jnp.allclose(out, ref, atol=5e-2, rtol=5e-2), "mismatch vs f32 ref"

    key = jax.random.PRNGKey(0)
    kA, kB = jax.random.split(key)

    # Case 1: demo-sized graph, hp_emb_size = 128 (lane-dense); tiles auto-picked.
    args1 = make_case(kA, B=2, N=16, E=20, K=4, D=128)
    out1 = jax.block_until_ready(propagation_model(*args1))
    assert out1.shape == (2, 16, 128)
    check(out1, args1)

    # Case 2: larger graph with forced multi-step grids (4 row tiles x 3 source
    # tiles) to exercise the scratch accumulator / pl.when init+finalize path.
    args2 = make_case(kB, B=2, N=64, E=96, K=4, D=128)
    out2 = jax.block_until_ready(
        propagation_model(*args2, row_tile=32, s_tile=128))
    assert out2.shape == (2, 64, 128)
    check(out2, args2)

    # Full-precision escape hatch (no bf16 quantization of embeddings/weights).
    out3 = jax.block_until_ready(
        propagation_model(*args1, compute_dtype=jnp.float32))
    check(out3, args1)

    print("KERNEL_OK")
</pallas_src>

<mosaic_0001>
module attributes {stable_mosaic.version = 11 : i64} {
  func.func @_prop_kernel(%arg0: i32, %arg1: i32, %arg2: memref<32x8xi32, #tpu.memory_space<vmem>>, %arg3: memref<32x128xbf16, #tpu.memory_space<vmem>>, %arg4: memref<128x128xbf16, #tpu.memory_space<vmem>>, %arg5: memref<256x128xbf16, #tpu.memory_space<vmem>>, %arg6: memref<1x128xf32, #tpu.memory_space<vmem>>, %arg7: memref<32x128xf32, #tpu.memory_space<vmem>>, %arg8: memref<32x128xf32, #tpu.memory_space<vmem>>) attributes {dimension_semantics = [#tpu.dimension_semantics<parallel>, #tpu.dimension_semantics<arbitrary>], iteration_bounds = array<i64: 1, 1>, scalar_prefetch = 0 : i64, scratch_operands = 1 : i64, tpu.core_type = #tpu.core_type<tc>, window_params = [{transform_indices = @transform_0, window_bounds = array<i64: 32, 8>}, {transform_indices = @transform_1, window_bounds = array<i64: 32, 128>}, {transform_indices = @transform_2, window_bounds = array<i64: 128, 128>}, {pipeline_mode = #tpu.pipeline_mode<synchronous>, transform_indices = @transform_3, window_bounds = array<i64: 256, 128>}, {pipeline_mode = #tpu.pipeline_mode<synchronous>, transform_indices = @transform_4, window_bounds = array<i64: 1, 128>}, {transform_indices = @transform_5, window_bounds = array<i64: 32, 128>}]} {
    %c0_i32 = arith.constant 0 : i32
    %0 = arith.cmpi eq, %arg1, %c0_i32 : i32
    %1 = arith.extui %0 : i1 to i32
    %c0_i32_0 = arith.constant 0 : i32
    %2 = arith.cmpi ne, %1, %c0_i32_0 : i32
    scf.if %2 {
      %cst_11 = arith.constant 0.000000e+00 : f32
      %66 = vector.broadcast %cst_11 : f32 to vector<32x128xf32>
      %c0_12 = arith.constant 0 : index
      %c0_13 = arith.constant 0 : index
      %67 = vector.load %arg8[%c0_12, %c0_13] : memref<32x128xf32, #tpu.memory_space<vmem>>, vector<32x128xf32>
      tpu.vector_store %arg8[%c0_12, %c0_13], %66 {strides = array<i32>} : memref<32x128xf32, #tpu.memory_space<vmem>>, vector<32x128xf32>,
    } else {
    }
    %c0 = arith.constant 0 : index
    %c0_1 = arith.constant 0 : index
    %3 = vector.load %arg2[%c0, %c0_1] : memref<32x8xi32, #tpu.memory_space<vmem>>, vector<32x8xi32>
    %c128_i32 = arith.constant 128 : i32
    %4 = arith.muli %arg1, %c128_i32 : i32
    %5 = vector.broadcast %4 : i32 to vector<32x8xi32>
    %6 = arith.subi %3, %5 : vector<32x8xi32>
    %7 = tpu.iota {dimensions = array<i32: 1>} : vector<32x128xi32>
    %cst = arith.constant 0.000000e+00 : f32
    %8 = vector.broadcast %cst : f32 to vector<32x128xf32>
    %9 = vector.extract_strided_slice %6 {offsets = [0, 0], sizes = [32, 1], strides = [1, 1]} : vector<32x8xi32> to vector<32x1xi32>
    %10 = vector.broadcast %9 : vector<32x1xi32> to vector<32x128xi32>
    %11 = arith.cmpi eq, %10, %7 : vector<32x128xi32>
    %12 = arith.extui %11 : vector<32x128xi1> to vector<32x128xi32>
    %13 = arith.sitofp %12 : vector<32x128xi32> to vector<32x128xf32>
    %14 = arith.addf %8, %13 : vector<32x128xf32>
    %15 = vector.extract_strided_slice %6 {offsets = [0, 1], sizes = [32, 1], strides = [1, 1]} : vector<32x8xi32> to vector<32x1xi32>
    %16 = vector.broadcast %15 : vector<32x1xi32> to vector<32x128xi32>
    %17 = arith.cmpi eq, %16, %7 : vector<32x128xi32>
    %18 = arith.extui %17 : vector<32x128xi1> to vector<32x128xi32>
    %19 = arith.sitofp %18 : vector<32x128xi32> to vector<32x128xf32>
    %20 = arith.addf %14, %19 : vector<32x128xf32>
    %21 = vector.extract_strided_slice %6 {offsets = [0, 2], sizes = [32, 1], strides = [1, 1]} : vector<32x8xi32> to vector<32x1xi32>
    %22 = vector.broadcast %21 : vector<32x1xi32> to vector<32x128xi32>
    %23 = arith.cmpi eq, %22, %7 : vector<32x128xi32>
    %24 = arith.extui %23 : vector<32x128xi1> to vector<32x128xi32>
    %25 = arith.sitofp %24 : vector<32x128xi32> to vector<32x128xf32>
    %26 = arith.addf %20, %25 : vector<32x128xf32>
    %27 = vector.extract_strided_slice %6 {offsets = [0, 3], sizes = [32, 1], strides = [1, 1]} : vector<32x8xi32> to vector<32x1xi32>
    %28 = vector.broadcast %27 : vector<32x1xi32> to vector<32x128xi32>
    %29 = arith.cmpi eq, %28, %7 : vector<32x128xi32>
    %30 = arith.extui %29 : vector<32x128xi1> to vector<32x128xi32>
    %31 = arith.sitofp %30 : vector<32x128xi32> to vector<32x128xf32>
    %32 = arith.addf %26, %31 : vector<32x128xf32>
    %33 = vector.extract_strided_slice %6 {offsets = [0, 4], sizes = [32, 1], strides = [1, 1]} : vector<32x8xi32> to vector<32x1xi32>
    %34 = vector.broadcast %33 : vector<32x1xi32> to vector<32x128xi32>
    %35 = arith.cmpi eq, %34, %7 : vector<32x128xi32>
    %36 = arith.extui %35 : vector<32x128xi1> to vector<32x128xi32>
    %37 = arith.sitofp %36 : vector<32x128xi32> to vector<32x128xf32>
    %38 = arith.addf %32, %37 : vector<32x128xf32>
    %39 = vector.extract_strided_slice %6 {offsets = [0, 5], sizes = [32, 1], strides = [1, 1]} : vector<32x8xi32> to vector<32x1xi32>
    %40 = vector.broadcast %39 : vector<32x1xi32> to vector<32x128xi32>
    %41 = arith.cmpi eq, %40, %7 : vector<32x128xi32>
    %42 = arith.extui %41 : vector<32x128xi1> to vector<32x128xi32>
    %43 = arith.sitofp %42 : vector<32x128xi32> to vector<32x128xf32>
    %44 = arith.addf %38, %43 : vector<32x128xf32>
    %45 = vector.extract_strided_slice %6 {offsets = [0, 6], sizes = [32, 1], strides = [1, 1]} : vector<32x8xi32> to vector<32x1xi32>
    %46 = vector.broadcast %45 : vector<32x1xi32> to vector<32x128xi32>
    %47 = arith.cmpi eq, %46, %7 : vector<32x128xi32>
    %48 = arith.extui %47 : vector<32x128xi1> to vector<32x128xi32>
    %49 = arith.sitofp %48 : vector<32x128xi32> to vector<32x128xf32>
    %50 = arith.addf %44, %49 : vector<32x128xf32>
    %51 = vector.extract_strided_slice %6 {offsets = [0, 7], sizes = [32, 1], strides = [1, 1]} : vector<32x8xi32> to vector<32x1xi32>
    %52 = vector.broadcast %51 : vector<32x1xi32> to vector<32x128xi32>
    %53 = arith.cmpi eq, %52, %7 : vector<32x128xi32>
    %54 = arith.extui %53 : vector<32x128xi1> to vector<32x128xi32>
    %55 = arith.sitofp %54 : vector<32x128xi32> to vector<32x128xf32>
    %56 = arith.addf %50, %55 : vector<32x128xf32>
    %c0_2 = arith.constant 0 : index
    %c0_3 = arith.constant 0 : index
    %57 = vector.load %arg8[%c0_2, %c0_3] : memref<32x128xf32, #tpu.memory_space<vmem>>, vector<32x128xf32>
    %58 = arith.truncf %56 : vector<32x128xf32> to vector<32x128xbf16>
    %c0_4 = arith.constant 0 : index
    %c0_5 = arith.constant 0 : index
    %59 = vector.load %arg4[%c0_4, %c0_5] : memref<128x128xbf16, #tpu.memory_space<vmem>>, vector<128x128xbf16>
    %cst_6 = arith.constant dense<0.000000e+00> : vector<32x128xf32>
    %60 = tpu.matmul %58, %59, %cst_6 {dimension_numbers = #tpu.dot_dimension_numbers<[1], [0], [0], [1], [0, 0, 1, 1], [], []>} : vector<32x128xbf16>, vector<128x128xbf16>, vector<32x128xf32> -> vector<32x128xf32>
    %61 = arith.addf %57, %60 : vector<32x128xf32>
    %c0_7 = arith.constant 0 : index
    %c0_8 = arith.constant 0 : index
    %62 = vector.load %arg8[%c0_7, %c0_8] : memref<32x128xf32, #tpu.memory_space<vmem>>, vector<32x128xf32>
    tpu.vector_store %arg8[%c0_7, %c0_8], %61 {strides = array<i32>} : memref<32x128xf32, #tpu.memory_space<vmem>>, vector<32x128xf32>,
    %c0_i32_9 = arith.constant 0 : i32
    %63 = arith.cmpi eq, %arg1, %c0_i32_9 : i32
    %64 = arith.extui %63 : i1 to i32
    %c0_i32_10 = arith.constant 0 : i32
    %65 = arith.cmpi ne, %64, %c0_i32_10 : i32
    scf.if %65 {
      %c0_11 = arith.constant 0 : index
      %c0_12 = arith.constant 0 : index
      %66 = vector.load %arg8[%c0_11, %c0_12] : memref<32x128xf32, #tpu.memory_space<vmem>>, vector<32x128xf32>
      %c0_13 = arith.constant 0 : index
      %c0_14 = arith.constant 0 : index
      %67 = vector.load %arg3[%c0_13, %c0_14] : memref<32x128xbf16, #tpu.memory_space<vmem>>, vector<32x128xbf16>
      %68 = arith.truncf %66 : vector<32x128xf32> to vector<32x128xbf16>
      %c0_15 = arith.constant 0 : index
      %c0_16 = arith.constant 0 : index
      %69 = vector.load %arg5[%c0_15, %c0_16] : memref<256x128xbf16, #tpu.memory_space<vmem>>, vector<128x128xbf16>
      %cst_17 = arith.constant dense<0.000000e+00> : vector<32x128xf32>
      %70 = tpu.matmul %68, %69, %cst_17 {dimension_numbers = #tpu.dot_dimension_numbers<[1], [0], [0], [1], [0, 0, 1, 1], [], []>} : vector<32x128xbf16>, vector<128x128xbf16>, vector<32x128xf32> -> vector<32x128xf32>
      %c128 = arith.constant 128 : index
      %c0_18 = arith.constant 0 : index
      %71 = vector.load %arg5[%c128, %c0_18] : memref<256x128xbf16, #tpu.memory_space<vmem>>, vector<128x128xbf16>
      %cst_19 = arith.constant dense<0.000000e+00> : vector<32x128xf32>
      %72 = tpu.matmul %67, %71, %cst_19 {dimension_numbers = #tpu.dot_dimension_numbers<[1], [0], [0], [1], [0, 0, 1, 1], [], []>} : vector<32x128xbf16>, vector<128x128xbf16>, vector<32x128xf32> -> vector<32x128xf32>
      %73 = arith.addf %70, %72 : vector<32x128xf32>
      %c0_20 = arith.constant 0 : index
      %c0_21 = arith.constant 0 : index
      %74 = vector.load %arg6[%c0_20, %c0_21] : memref<1x128xf32, #tpu.memory_space<vmem>>, vector<1x128xf32>
      %75 = vector.broadcast %74 : vector<1x128xf32> to vector<32x128xf32>
      %76 = arith.addf %73, %75 : vector<32x128xf32>
      %77 = math.tanh %76 : vector<32x128xf32>
      %c0_22 = arith.constant 0 : index
      %c0_23 = arith.constant 0 : index
      %78 = vector.load %arg7[%c0_22, %c0_23] : memref<32x128xf32, #tpu.memory_space<vmem>>, vector<32x128xf32>
      tpu.vector_store %arg7[%c0_22, %c0_23], %77 {strides = array<i32>} : memref<32x128xf32, #tpu.memory_space<vmem>>, vector<32x128xf32>,
    } else {
    }
    return
  }
  func.func @transform_0(%arg0: i32, %arg1: i32) -> (i32, i32) {
    %c0_i32 = arith.constant 0 : i32
    %c0_i32_0 = arith.constant 0 : i32
    return %arg0, %c0_i32 : i32, i32
  }
  func.func @transform_1(%arg0: i32, %arg1: i32) -> (i32, i32) {
    %c0_i32 = arith.constant 0 : i32
    %c0_i32_0 = arith.constant 0 : i32
    return %arg0, %c0_i32 : i32, i32
  }
  func.func @transform_2(%arg0: i32, %arg1: i32) -> (i32, i32) {
    %c0_i32 = arith.constant 0 : i32
    %c0_i32_0 = arith.constant 0 : i32
    return %arg1, %c0_i32 : i32, i32
  }
  func.func @transform_3(%arg0: i32, %arg1: i32) -> (i32, i32) {
    %c0_i32 = arith.constant 0 : i32
    %c0_i32_0 = arith.constant 0 : i32
    %c0_i32_1 = arith.constant 0 : i32
    return %c0_i32, %c0_i32_0 : i32, i32
  }
  func.func @transform_4(%arg0: i32, %arg1: i32) -> (i32, i32) {
    %c0_i32 = arith.constant 0 : i32
    %c0_i32_0 = arith.constant 0 : i32
    %c0_i32_1 = arith.constant 0 : i32
    return %c0_i32, %c0_i32_0 : i32, i32
  }
  func.func @transform_5(%arg0: i32, %arg1: i32) -> (i32, i32) {
    %c0_i32 = arith.constant 0 : i32
    %c0_i32_0 = arith.constant 0 : i32
    return %arg0, %c0_i32 : i32, i32
  }
}

module attributes {stable_mosaic.version = 11 : i64} {
  func.func @_prop_kernel(%arg0: i32, %arg1: i32, %arg2: memref<32x8xi32, #tpu.memory_space<vmem>>, %arg3: memref<32x128xbf16, #tpu.memory_space<vmem>>, %arg4: memref<128x128xbf16, #tpu.memory_space<vmem>>, %arg5: memref<256x128xbf16, #tpu.memory_space<vmem>>, %arg6: memref<1x128xf32, #tpu.memory_space<vmem>>, %arg7: memref<32x128xf32, #tpu.memory_space<vmem>>, %arg8: memref<32x128xf32, #tpu.memory_space<vmem>>) attributes {dimension_semantics = [#tpu.dimension_semantics<parallel>, #tpu.dimension_semantics<arbitrary>], iteration_bounds = array<i64: 1, 1>, scalar_prefetch = 0 : i64, scratch_operands = 1 : i64, tpu.core_type = #tpu.core_type<tc>, window_params = [{transform_indices = @transform_0, window_bounds = array<i64: 32, 8>}, {transform_indices = @transform_1, window_bounds = array<i64: 32, 128>}, {transform_indices = @transform_2, window_bounds = array<i64: 128, 128>}, {pipeline_mode = #tpu.pipeline_mode<synchronous>, transform_indices = @transform_3, window_bounds = array<i64: 256, 128>}, {pipeline_mode = #tpu.pipeline_mode<synchronous>, transform_indices = @transform_4, window_bounds = array<i64: 1, 128>}, {transform_indices = @transform_5, window_bounds = array<i64: 32, 128>}]} {
    %c0_i32 = arith.constant 0 : i32
    %0 = arith.cmpi eq, %arg1, %c0_i32 : i32
    %1 = arith.extui %0 : i1 to i32
    %c0_i32_0 = arith.constant 0 : i32
    %2 = arith.cmpi ne, %1, %c0_i32_0 : i32
    scf.if %2 {
      %cst_11 = arith.constant 0.000000e+00 : f32
      %66 = vector.broadcast %cst_11 : f32 to vector<32x128xf32>
      %c0_12 = arith.constant 0 : index
      %c0_13 = arith.constant 0 : index
      %67 = vector.load %arg8[%c0_12, %c0_13] : memref<32x128xf32, #tpu.memory_space<vmem>>, vector<32x128xf32>
      tpu.vector_store %arg8[%c0_12, %c0_13], %66 {strides = array<i32>} : memref<32x128xf32, #tpu.memory_space<vmem>>, vector<32x128xf32>,
    } else {
    }
    %c0 = arith.constant 0 : index
    %c0_1 = arith.constant 0 : index
    %3 = vector.load %arg2[%c0, %c0_1] : memref<32x8xi32, #tpu.memory_space<vmem>>, vector<32x8xi32>
    %c128_i32 = arith.constant 128 : i32
    %4 = arith.muli %arg1, %c128_i32 : i32
    %5 = vector.broadcast %4 : i32 to vector<32x8xi32>
    %6 = arith.subi %3, %5 : vector<32x8xi32>
    %7 = tpu.iota {dimensions = array<i32: 1>} : vector<32x128xi32>
    %cst = arith.constant 0.000000e+00 : f32
    %8 = vector.broadcast %cst : f32 to vector<32x128xf32>
    %9 = vector.extract_strided_slice %6 {offsets = [0, 0], sizes = [32, 1], strides = [1, 1]} : vector<32x8xi32> to vector<32x1xi32>
    %10 = vector.broadcast %9 : vector<32x1xi32> to vector<32x128xi32>
    %11 = arith.cmpi eq, %10, %7 : vector<32x128xi32>
    %12 = arith.extui %11 : vector<32x128xi1> to vector<32x128xi32>
    %13 = arith.sitofp %12 : vector<32x128xi32> to vector<32x128xf32>
    %14 = arith.addf %8, %13 : vector<32x128xf32>
    %15 = vector.extract_strided_slice %6 {offsets = [0, 1], sizes = [32, 1], strides = [1, 1]} : vector<32x8xi32> to vector<32x1xi32>
    %16 = vector.broadcast %15 : vector<32x1xi32> to vector<32x128xi32>
    %17 = arith.cmpi eq, %16, %7 : vector<32x128xi32>
    %18 = arith.extui %17 : vector<32x128xi1> to vector<32x128xi32>
    %19 = arith.sitofp %18 : vector<32x128xi32> to vector<32x128xf32>
    %20 = arith.addf %14, %19 : vector<32x128xf32>
    %21 = vector.extract_strided_slice %6 {offsets = [0, 2], sizes = [32, 1], strides = [1, 1]} : vector<32x8xi32> to vector<32x1xi32>
    %22 = vector.broadcast %21 : vector<32x1xi32> to vector<32x128xi32>
    %23 = arith.cmpi eq, %22, %7 : vector<32x128xi32>
    %24 = arith.extui %23 : vector<32x128xi1> to vector<32x128xi32>
    %25 = arith.sitofp %24 : vector<32x128xi32> to vector<32x128xf32>
    %26 = arith.addf %20, %25 : vector<32x128xf32>
    %27 = vector.extract_strided_slice %6 {offsets = [0, 3], sizes = [32, 1], strides = [1, 1]} : vector<32x8xi32> to vector<32x1xi32>
    %28 = vector.broadcast %27 : vector<32x1xi32> to vector<32x128xi32>
    %29 = arith.cmpi eq, %28, %7 : vector<32x128xi32>
    %30 = arith.extui %29 : vector<32x128xi1> to vector<32x128xi32>
    %31 = arith.sitofp %30 : vector<32x128xi32> to vector<32x128xf32>
    %32 = arith.addf %26, %31 : vector<32x128xf32>
    %33 = vector.extract_strided_slice %6 {offsets = [0, 4], sizes = [32, 1], strides = [1, 1]} : vector<32x8xi32> to vector<32x1xi32>
    %34 = vector.broadcast %33 : vector<32x1xi32> to vector<32x128xi32>
    %35 = arith.cmpi eq, %34, %7 : vector<32x128xi32>
    %36 = arith.extui %35 : vector<32x128xi1> to vector<32x128xi32>
    %37 = arith.sitofp %36 : vector<32x128xi32> to vector<32x128xf32>
    %38 = arith.addf %32, %37 : vector<32x128xf32>
    %39 = vector.extract_strided_slice %6 {offsets = [0, 5], sizes = [32, 1], strides = [1, 1]} : vector<32x8xi32> to vector<32x1xi32>
    %40 = vector.broadcast %39 : vector<32x1xi32> to vector<32x128xi32>
    %41 = arith.cmpi eq, %40, %7 : vector<32x128xi32>
    %42 = arith.extui %41 : vector<32x128xi1> to vector<32x128xi32>
    %43 = arith.sitofp %42 : vector<32x128xi32> to vector<32x128xf32>
    %44 = arith.addf %38, %43 : vector<32x128xf32>
    %45 = vector.extract_strided_slice %6 {offsets = [0, 6], sizes = [32, 1], strides = [1, 1]} : vector<32x8xi32> to vector<32x1xi32>
    %46 = vector.broadcast %45 : vector<32x1xi32> to vector<32x128xi32>
    %47 = arith.cmpi eq, %46, %7 : vector<32x128xi32>
    %48 = arith.extui %47 : vector<32x128xi1> to vector<32x128xi32>
    %49 = arith.sitofp %48 : vector<32x128xi32> to vector<32x128xf32>
    %50 = arith.addf %44, %49 : vector<32x128xf32>
    %51 = vector.extract_strided_slice %6 {offsets = [0, 7], sizes = [32, 1], strides = [1, 1]} : vector<32x8xi32> to vector<32x1xi32>
    %52 = vector.broadcast %51 : vector<32x1xi32> to vector<32x128xi32>
    %53 = arith.cmpi eq, %52, %7 : vector<32x128xi32>
    %54 = arith.extui %53 : vector<32x128xi1> to vector<32x128xi32>
    %55 = arith.sitofp %54 : vector<32x128xi32> to vector<32x128xf32>
    %56 = arith.addf %50, %55 : vector<32x128xf32>
    %c0_2 = arith.constant 0 : index
    %c0_3 = arith.constant 0 : index
    %57 = vector.load %arg8[%c0_2, %c0_3] : memref<32x128xf32, #tpu.memory_space<vmem>>, vector<32x128xf32>
    %58 = arith.truncf %56 : vector<32x128xf32> to vector<32x128xbf16>
    %c0_4 = arith.constant 0 : index
    %c0_5 = arith.constant 0 : index
    %59 = vector.load %arg4[%c0_4, %c0_5] : memref<128x128xbf16, #tpu.memory_space<vmem>>, vector<128x128xbf16>
    %cst_6 = arith.constant dense<0.000000e+00> : vector<32x128xf32>
    %60 = tpu.matmul %58, %59, %cst_6 {dimension_numbers = #tpu.dot_dimension_numbers<[1], [0], [0], [1], [0, 0, 1, 1], [], []>} : vector<32x128xbf16>, vector<128x128xbf16>, vector<32x128xf32> -> vector<32x128xf32>
    %61 = arith.addf %57, %60 : vector<32x128xf32>
    %c0_7 = arith.constant 0 : index
    %c0_8 = arith.constant 0 : index
    %62 = vector.load %arg8[%c0_7, %c0_8] : memref<32x128xf32, #tpu.memory_space<vmem>>, vector<32x128xf32>
    tpu.vector_store %arg8[%c0_7, %c0_8], %61 {strides = array<i32>} : memref<32x128xf32, #tpu.memory_space<vmem>>, vector<32x128xf32>,
    %c0_i32_9 = arith.constant 0 : i32
    %63 = arith.cmpi eq, %arg1, %c0_i32_9 : i32
    %64 = arith.extui %63 : i1 to i32
    %c0_i32_10 = arith.constant 0 : i32
    %65 = arith.cmpi ne, %64, %c0_i32_10 : i32
    scf.if %65 {
      %c0_11 = arith.constant 0 : index
      %c0_12 = arith.constant 0 : index
      %66 = vector.load %arg8[%c0_11, %c0_12] : memref<32x128xf32, #tpu.memory_space<vmem>>, vector<32x128xf32>
      %c0_13 = arith.constant 0 : index
      %c0_14 = arith.constant 0 : index
      %67 = vector.load %arg3[%c0_13, %c0_14] : memref<32x128xbf16, #tpu.memory_space<vmem>>, vector<32x128xbf16>
      %68 = arith.truncf %66 : vector<32x128xf32> to vector<32x128xbf16>
      %c0_15 = arith.constant 0 : index
      %c0_16 = arith.constant 0 : index
      %69 = vector.load %arg5[%c0_15, %c0_16] : memref<256x128xbf16, #tpu.memory_space<vmem>>, vector<128x128xbf16>
      %cst_17 = arith.constant dense<0.000000e+00> : vector<32x128xf32>
      %70 = tpu.matmul %68, %69, %cst_17 {dimension_numbers = #tpu.dot_dimension_numbers<[1], [0], [0], [1], [0, 0, 1, 1], [], []>} : vector<32x128xbf16>, vector<128x128xbf16>, vector<32x128xf32> -> vector<32x128xf32>
      %c128 = arith.constant 128 : index
      %c0_18 = arith.constant 0 : index
      %71 = vector.load %arg5[%c128, %c0_18] : memref<256x128xbf16, #tpu.memory_space<vmem>>, vector<128x128xbf16>
      %cst_19 = arith.constant dense<0.000000e+00> : vector<32x128xf32>
      %72 = tpu.matmul %67, %71, %cst_19 {dimension_numbers = #tpu.dot_dimension_numbers<[1], [0], [0], [1], [0, 0, 1, 1], [], []>} : vector<32x128xbf16>, vector<128x128xbf16>, vector<32x128xf32> -> vector<32x128xf32>
      %73 = arith.addf %70, %72 : vector<32x128xf32>
      %c0_20 = arith.constant 0 : index
      %c0_21 = arith.constant 0 : index
      %74 = vector.load %arg6[%c0_20, %c0_21] : memref<1x128xf32, #tpu.memory_space<vmem>>, vector<1x128xf32>
      %75 = vector.broadcast %74 : vector<1x128xf32> to vector<32x128xf32>
      %76 = arith.addf %73, %75 : vector<32x128xf32>
      %77 = math.tanh %76 : vector<32x128xf32>
      %c0_22 = arith.constant 0 : index
      %c0_23 = arith.constant 0 : index
      %78 = vector.load %arg7[%c0_22, %c0_23] : memref<32x128xf32, #tpu.memory_space<vmem>>, vector<32x128xf32>
      tpu.vector_store %arg7[%c0_22, %c0_23], %77 {strides = array<i32>} : memref<32x128xf32, #tpu.memory_space<vmem>>, vector<32x128xf32>,
    } else {
    }
    return
  }
  func.func @transform_0(%arg0: i32, %arg1: i32) -> (i32, i32) {
    %c0_i32 = arith.constant 0 : i32
    %c0_i32_0 = arith.constant 0 : i32
    return %arg0, %c0_i32 : i32, i32
  }
  func.func @transform_1(%arg0: i32, %arg1: i32) -> (i32, i32) {
    %c0_i32 = arith.constant 0 : i32
    %c0_i32_0 = arith.constant 0 : i32
    return %arg0, %c0_i32 : i32, i32
  }
  func.func @transform_2(%arg0: i32, %arg1: i32) -> (i32, i32) {
    %c0_i32 = arith.constant 0 : i32
    %c0_i32_0 = arith.constant 0 : i32
    return %arg1, %c0_i32 : i32, i32
  }
  func.func @transform_3(%arg0: i32, %arg1: i32) -> (i32, i32) {
    %c0_i32 = arith.constant 0 : i32
    %c0_i32_0 = arith.constant 0 : i32
    %c0_i32_1 = arith.constant 0 : i32
    return %c0_i32, %c0_i32_0 : i32, i32
  }
  func.func @transform_4(%arg0: i32, %arg1: i32) -> (i32, i32) {
    %c0_i32 = arith.constant 0 : i32
    %c0_i32_0 = arith.constant 0 : i32
    %c0_i32_1 = arith.constant 0 : i32
    return %c0_i32, %c0_i32_0 : i32, i32
  }
  func.func @transform_5(%arg0: i32, %arg1: i32) -> (i32, i32) {
    %c0_i32 = arith.constant 0 : i32
    %c0_i32_0 = arith.constant 0 : i32
    return %arg0, %c0_i32 : i32, i32
  }
}

</mosaic_0001>

<bundles_post_ra>
// kernel: tpu_custom_call.1
= control target key start
LH: loop header
LB: loop body
LE: loop exit
PB: predicated region body
PF: predicated region fallthrough
CT: control target
= control target key end

     0   :  { %10 = vsyncpa [#allocation4], 0  ;;  %s1082_s0 = inlined_call_operand.vmem [shape: s32[32,8], index: 0, kind: input, shape index: {}]   ;;  %s1083_s1 = inlined_call_operand.vmem [shape: bf16[32,128], index: 1, kind: input, shape index: {}]   ;;  %s1084_s2 = inlined_call_operand.hbm [shape: bf16[128,128], index: 2, kind: input, shape index: {}]   ;;  %s1085_s3 = inlined_call_operand.hbm [shape: bf16[256,128], index: 3, kind: input, shape index: {}]   ;;  %s1086_s4 = inlined_call_operand.vmem [shape: f32[1,128], index: 4, kind: input, shape index: {}]   ;;  %s1087_s5 = inlined_call_operand.hbm [shape: f32[32,128], index: 5, kind: output, shape index: {}]  }
   0x1   :  { %11 = vsyncpa [#allocation7], 0 }
   0x2   :  { %12 = vsyncpa [#allocation5], 0  ;;  %s21_s20 = sshll.u32 %s1084_s2, 4  ;;  %s922_s21 = smov [#allocation3]   ;;  %s22_s20 = int_to_ptr.hbm [resolvable:$true] %s21_s20 }
   0x3   :  { %s23_s22 = sshll.u32 %s922_s21, 4  ;;  %s34_s25 = sshll.u32 %s1085_s3, 4  ;;  %s24_s22 = int_to_ptr.vmem [resolvable:$true] %s23_s22  ;;  %s35_s25 = int_to_ptr.hbm [resolvable:$true] %s34_s25 }
   0x4   :  { %s923_s26 = smov 64   ;;  %s924_s27 = smov 4  }
   0x5   :  { %29 = dma.hbm_to_vmem [thread:$0]  %s22_s20, 1024, %s24_s22, [#allocation4], %s923_s26, %s923_s26, %s924_s27  }
   0x6   :  { %s925_s28 = smov [#allocation6]  }
   0x7   :  { %s36_s29 = sshll.u32 %s925_s28, 4  ;;  %s37_s29 = int_to_ptr.vmem [resolvable:$true] %s36_s29 }
   0x8   :  { %42 = dma.hbm_to_vmem [thread:$0]  %s35_s25, 2048, %s37_s29, [#allocation7], %s923_s26, %s923_s26, %s924_s27  }
   0x9   :  { %916 = dma.done.wait [#allocation4], 1024  }
   0xa   :  { %917 = vsyncadd [#allocation4], 4294966272 }
   0xb   :  { %918 = dma.done.wait [#allocation7], 2048  }
   0xc   :  { %919 = vsyncadd [#allocation7], 4294965248  ;;  %v926_v0 = vmov 2   ;;  %v927_v1 = vmov 1   ;;  %v928_v2 = vmov 0   ;;  %v61_v3 = vld [vmem:[%s1082_s0] sm:$0xff]  ;;  %v71_v32 = vlaneseq }
   0xd   :  { %809 = vset.pattern.permute.xlu2 %v926_v0  ;;  %808 = vset.pattern.permute.xlu1 %v927_v1  ;;  %v62_v4 = vld [vmem:[%s1082_s0 + $0x8] sm:$0xff]  ;;  %v929_v5 = vmov 4   ;;  %v930_v6 = vmov 3   ;;  %v931_v7 = vmov 5   ;;  %v932_v8 = vmov 6   ;;  %v64_v9 = vld [vmem:[%s1082_s0 + $0x18] sm:$0xff] }
   0xe   :  { %807 = vset.pattern.permute.xlu0 %v928_v2  ;;  %130 = vperm.xlu2 %809, %v61_v3   ;;  %v63_v10 = vld [vmem:[%s1082_s0 + $0x10] sm:$0xff]  ;;  %v933_v11 = vmov 7   ;;  %v764_v15 = vld [vmem:[#allocation3 + $0x38] sm:$0xff]  ;;  %v762_v20 = vld [vmem:[#allocation3 + $0x28] sm:$0xff]  ;;  %v994_v35 = vand.u32 127, %v71_v32  ;;  %v934_v38 = vmov 0.0  }
   0xf   :  { %102 = vperm.xlu1 %808, %v61_v3   ;;  %74 = vperm.xlu0 %807, %v61_v3   ;;  %v763_v18 = vld [vmem:[#allocation3 + $0x30] sm:$0xff]  ;;  %v761_v23 = vld [vmem:[#allocation3 + $0x20] sm:$0xff]  ;;  %v760_v24 = vld [vmem:[#allocation3 + $0x18] sm:$0xff]  ;;  %s607_s18 = sshll.u32 %s1087_s5, 4  ;;  %s936_s19 = smov 128   ;;  %s608_s18 = int_to_ptr.hbm [resolvable:$true] %s607_s18 }
  0x10   :  { %367 = vmatpush.bf16.msra.mxu0 %v764_v15  ;;  %783 = vmatpush.bf16.msra.mxu3 %v764_v15  ;;  %v759_v26 = vld [vmem:[#allocation3 + $0x10] sm:$0xff]  ;;  %v758_v29 = vld [vmem:[#allocation3 + $0x8] sm:$0xff]  ;;  %v757_v30 = vld [vmem:[#allocation3] sm:$0xff]  ;;  %s937_s20 = smov 8  }
  0x11   :  { %v782_v15 = vld [vmem:[#allocation6 + $0x78] sm:$0xff] }
  0x12   :  { %499 = vmatpush.bf16.msra.mxu1 %v782_v15 }
  0x14   :  { %368 = vmatpush.bf16.msra.mxu0 %v763_v18  ;;  %784 = vmatpush.bf16.msra.mxu3 %v763_v18  ;;  %v781_v18 = vld [vmem:[#allocation6 + $0x70] sm:$0xff] }
  0x16   :  { %133 = vperm.xlu2 %809, %v62_v4   ;;  %500 = vmatpush.bf16.msra.mxu1 %v781_v18 }
  0x17   :  { %105 = vperm.xlu1 %808, %v62_v4   ;;  %77 = vperm.xlu0 %807, %v62_v4  }
  0x18   :  { %369 = vmatpush.bf16.msra.mxu0 %v762_v20  ;;  %785 = vmatpush.bf16.msra.mxu3 %v762_v20 }
  0x1c   :  { %370 = vmatpush.bf16.msra.mxu0 %v761_v23  ;;  %786 = vmatpush.bf16.msra.mxu3 %v761_v23 }
  0x1e   :  { %812 = vset.pattern.permute.xlu2 %v929_v5 }
  0x1f   :  { %811 = vset.pattern.permute.xlu1 %v930_v6  ;;  %810 = vset.pattern.permute.xlu0 %v930_v6 }
  0x20   :  { %186 = vperm.xlu2 %812, %v61_v3   ;;  %161 = vperm.xlu1 %811, %v62_v4  }
  0x21   :  { %158 = vperm.xlu0 %810, %v61_v3   ;;  %371 = vmatpush.bf16.msra.mxu0 %v760_v24 }
  0x22   :  { %787 = vmatpush.bf16.msra.mxu3 %v760_v24 }
  0x25   :  { %372 = vmatpush.bf16.msra.mxu0 %v759_v26 }
  0x26   :  { %788 = vmatpush.bf16.msra.mxu3 %v759_v26 }
  0x28   :  { %814 = vset.pattern.permute.xlu2 %v931_v7  ;;  %813 = vset.pattern.permute.xlu1 %v929_v5 }
  0x29   :  { %819 = vset.pattern.permute.xlu0 %v932_v8  ;;  %214 = vperm.xlu2 %814, %v61_v3  }
  0x2a   :  { %189 = vperm.xlu1 %813, %v62_v4   ;;  %242 = vperm.xlu0 %819, %v61_v3  }
  0x2b   :  { %373 = vmatpush.bf16.msra.mxu0 %v758_v29  ;;  %789 = vmatpush.bf16.msra.mxu3 %v758_v29  ;;  %v771_v29 = vld [vmem:[#allocation6 + $0x20] sm:$0xff] }
  0x2f   :  { %374 = vmatpush.bf16.msra.mxu0 %v757_v30  ;;  %790 = vmatpush.bf16.msra.mxu3 %v757_v30  ;;  %v779_v30 = vld [vmem:[#allocation6 + $0x60] sm:$0xff] }
  0x31   :  { %816 = vset.pattern.permute.xlu2 %v928_v2 }
  0x32   :  { %815 = vset.pattern.permute.xlu1 %v928_v2  ;;  %824 = vset.pattern.permute.xlu0 %v933_v11 }
  0x33   :  { %83 = vperm.xlu2 %816, %v64_v9   ;;  %80 = vperm.xlu1 %815, %v63_v10  }
  0x34   :  { %273 = vperm.xlu0 %824, %v62_v4  }
  0x3b   :  { %818 = vset.pattern.permute.xlu2 %v927_v1  ;;  %817 = vset.pattern.permute.xlu1 %v927_v1 }
  0x3c   :  { %825 = vset.pattern.permute.xlu0 %v931_v7  ;;  %111 = vperm.xlu2 %818, %v64_v9  }
  0x3d   :  { %108 = vperm.xlu1 %817, %v63_v10   ;;  %217 = vperm.xlu0 %825, %v62_v4  }
  0x44   :  { %821 = vset.pattern.permute.xlu2 %v926_v0 }
  0x45   :  { %820 = vset.pattern.permute.xlu1 %v932_v8  ;;  %136 = vperm.xlu2 %821, %v63_v10  }
  0x46   :  { %245 = vperm.xlu1 %820, %v62_v4   ;;  %220 = vperm.xlu0 %825, %v63_v10  }
  0x4d   :  { %823 = vset.pattern.permute.xlu2 %v933_v11 }
  0x4e   :  { %822 = vset.pattern.permute.xlu1 %v926_v0  ;;  %270 = vperm.xlu2 %823, %v61_v3  }
  0x4f   :  { %139 = vperm.xlu1 %822, %v64_v9   ;;  %834 = vset.pattern.permute.xlu0 %v933_v11 }
  0x50   :  { %279 = vperm.xlu0 %834, %v64_v9  }
  0x56   :  { %827 = vset.pattern.permute.xlu2 %v930_v6 }
  0x57   :  { %826 = vset.pattern.permute.xlu1 %v930_v6  ;;  %167 = vperm.xlu2 %827, %v64_v9  }
  0x58   :  { %164 = vperm.xlu1 %826, %v63_v10  }
  0x5f   :  { %829 = vset.pattern.permute.xlu2 %v929_v5 }
  0x60   :  { %828 = vset.pattern.permute.xlu1 %v929_v5  ;;  %195 = vperm.xlu2 %829, %v64_v9  }
  0x61   :  { %192 = vperm.xlu1 %828, %v63_v10  }
  0x68   :  { %831 = vset.pattern.permute.xlu2 %v932_v8  ;;  %v131_v12 = vpop.permute.xlu2 %130 }
  0x69   :  { %830 = vset.pattern.permute.xlu1 %v931_v7  ;;  %248 = vperm.xlu2 %831, %v63_v10   ;;  %vm141_vm2 = vcmp.eq.s32.totalorder %v131_v12, %v994_v35 }
  0x6a   :  { %223 = vperm.xlu1 %830, %v64_v9   ;;  %v629_v43 = vsel %vm141_vm2, 1.0, %v934_v38 }
  0x70   :  { %v986_v13 = vpop.permute.xlu2 %133 }
  0x71   :  { %833 = vset.pattern.permute.xlu2 %v933_v11  ;;  %vm142_vm6 = vcmp.eq.s32.totalorder %v986_v13, %v994_v35 }
  0x72   :  { %832 = vset.pattern.permute.xlu1 %v932_v8  ;;  %276 = vperm.xlu2 %833, %v63_v10   ;;  %v630_v52 = vsel %vm142_vm6, 1.0, %v934_v38 }
  0x73   :  { %251 = vperm.xlu1 %832, %v64_v9  }
  0x7a   :  { %v988_v16 = vpop.permute.xlu2 %186 }
  0x7b   :  { %vm197_vm7 = vcmp.eq.s32.totalorder %v988_v16, %v994_v35 }
  0x7c   :  { %v637_v53 = vsel %vm197_vm7, 1.0, %v934_v38 }
  0x81   :  { %v103_v14 = vpop.permute.xlu1 %102  ;;  %v75_v17 = vpop.permute.xlu0 %74 }
  0x82   :  { %vm113_vm0 = vcmp.eq.s32.totalorder %v103_v14, %v994_v35  ;;  %vm85_vm1 = vcmp.eq.s32.totalorder %v75_v17, %v994_v35  ;;  %v774_v14 = vld [vmem:[#allocation6 + $0x38] sm:$0xff]  ;;  %v773_v17 = vld [vmem:[#allocation6 + $0x30] sm:$0xff] }
  0x83   :  { %v215_v22 = vpop.permute.xlu2 %214  ;;  %v625_v39 = vsel %vm113_vm0, 1.0, %v934_v38  ;;  %v621_v40 = vsel %vm85_vm1, 1.0, %v934_v38  ;;  %566 = vmatpush.bf16.msra.mxu2 %v774_v14  ;;  %v835_v14 = vld [vmem:[%s1086_s4] ss:$0 sm:$0xff] }
  0x84   :  { %v125_v42 = vadd.f32 %v625_v39, %v621_v40  ;;  %vm225_vm10 = vcmp.eq.s32.totalorder %v215_v22, %v994_v35  ;;  %v780_v22 = vld [vmem:[#allocation6 + $0x68] sm:$0xff] }
  0x85   :  { %v641_v60 = vsel %vm225_vm10, 1.0, %v934_v38  ;;  %501 = vmatpush.bf16.msra.mxu1 %v780_v22 }
  0x86   :  { %v153_v48 = vadd.f32 %v629_v43, %v125_v42  ;;  %v770_v42 = vld [vmem:[#allocation6 + $0x18] sm:$0xff] }
  0x87   :  { %567 = vmatpush.bf16.msra.mxu2 %v773_v17 }
  0x89   :  { %v106_v19 = vpop.permute.xlu1 %105  ;;  %v78_v21 = vpop.permute.xlu0 %77  ;;  %502 = vmatpush.bf16.msra.mxu1 %v779_v30 }
  0x8a   :  { %vm114_vm3 = vcmp.eq.s32.totalorder %v106_v19, %v994_v35  ;;  %vm86_vm4 = vcmp.eq.s32.totalorder %v78_v21, %v994_v35  ;;  %v772_v21 = vld [vmem:[#allocation6 + $0x28] sm:$0xff] }
  0x8b   :  { %v626_v44 = vsel %vm114_vm3, 1.0, %v934_v38  ;;  %v622_v45 = vsel %vm86_vm4, 1.0, %v934_v38  ;;  %568 = vmatpush.bf16.msra.mxu2 %v772_v21 }
  0x8c   :  { %v126_v47 = vadd.f32 %v626_v44, %v622_v45 }
  0x8d   :  { %v990_v28 = vpop.permute.xlu2 %83 }
  0x8e   :  { %v154_v55 = vadd.f32 %v630_v52, %v126_v47  ;;  %vm88_vm2 = vcmp.eq.s32.totalorder %v990_v28, %v994_v35 }
  0x8f   :  { %569 = vmatpush.bf16.msra.mxu2 %v771_v29 }
  0x92   :  { %v162_v25 = vpop.permute.xlu1 %161 }
  0x93   :  { %v159_v27 = vpop.permute.xlu0 %158  ;;  %vm170_vm8 = vcmp.eq.s32.totalorder %v162_v25, %v994_v35  ;;  %v624_v25 = vsel %vm88_vm2, 1.0, %v934_v38  ;;  %570 = vmatpush.bf16.msra.mxu2 %v770_v42 }
  0x94   :  { %vm169_vm5 = vcmp.eq.s32.totalorder %v159_v27, %v994_v35  ;;  %v634_v54 = vsel %vm170_vm8, 1.0, %v934_v38 }
  0x95   :  { %v633_v46 = vsel %vm169_vm5, 1.0, %v934_v38  ;;  %v182_v58 = vadd.f32 %v634_v54, %v154_v55 }
  0x96   :  { %v992_v34 = vpop.permute.xlu2 %111  ;;  %v181_v51 = vadd.f32 %v633_v46, %v153_v48 }
  0x97   :  { %vm116_vm3 = vcmp.eq.s32.totalorder %v992_v34, %v994_v35 }
  0x98   :  { %v209_v59 = vadd.f32 %v637_v53, %v181_v51  ;;  %v628_v26 = vsel %vm116_vm3, 1.0, %v934_v38 }
  0x99   :  { %v128_v34 = vadd.f32 %v628_v26, %v624_v25 }
  0x9a   :  { %v237_v1 = vadd.f32 %v641_v60, %v209_v59 }
  0x9c   :  { %v190_v31 = vpop.permute.xlu1 %189  ;;  %v243_v33 = vpop.permute.xlu0 %242 }
  0x9d   :  { %vm198_vm9 = vcmp.eq.s32.totalorder %v190_v31, %v994_v35  ;;  %vm253_vm12 = vcmp.eq.s32.totalorder %v243_v33, %v994_v35 }
  0x9e   :  { %v638_v56 = vsel %vm198_vm9, 1.0, %v934_v38  ;;  %v645_v63 = vsel %vm253_vm12, 1.0, %v934_v38 }
  0x9f   :  { %v1005_v41 = vpop.permute.xlu2 %136  ;;  %v210_v62 = vadd.f32 %v638_v56, %v182_v58  ;;  %v265_v6 = vadd.f32 %v645_v63, %v237_v1  ;;  %v778_v1 = vld [vmem:[#allocation6 + $0x58] sm:$0xff] }
  0xa0   :  { %vm143_vm4 = vcmp.eq.s32.totalorder %v1005_v41, %v994_v35  ;;  %503 = vmatpush.bf16.msra.mxu1 %v778_v1 }
  0xa1   :  { %v631_v27 = vsel %vm143_vm4, 1.0, %v934_v38 }
  0xa5   :  { %v998_v36 = vpop.permute.xlu1 %80 }
  0xa6   :  { %v274_v37 = vpop.permute.xlu0 %273  ;;  %vm87_vm1 = vcmp.eq.s32.totalorder %v998_v36, %v994_v35 }
  0xa7   :  { %vm282_vm13 = vcmp.eq.s32.totalorder %v274_v37, %v994_v35  ;;  %v623_v23 = vsel %vm87_vm1, 1.0, %v934_v38 }
  0xa8   :  { %v271_v57 = vpop.permute.xlu2 %270  ;;  %v650_v3 = vsel %vm282_vm13, 1.0, %v934_v38 }
  0xa9   :  { %vm281_vm14 = vcmp.eq.s32.totalorder %v271_v57, %v994_v35 }
  0xaa   :  { %v649_v4 = vsel %vm281_vm14, 1.0, %v934_v38 }
  0xab   :  { %v293_v8 = vadd.f32 %v649_v4, %v265_v6  ;;  %v776_v4 = vld [vmem:[#allocation6 + $0x48] sm:$0xff] }
  0xaf   :  { %v109_v49 = vpop.permute.xlu1 %108  ;;  %v218_v50 = vpop.permute.xlu0 %217 }
  0xb0   :  { %vm226_vm11 = vcmp.eq.s32.totalorder %v218_v50, %v994_v35  ;;  %vm115_vm0 = vcmp.eq.s32.totalorder %v109_v49, %v994_v35 }
  0xb1   :  { %v642_v61 = vsel %vm226_vm11, 1.0, %v934_v38  ;;  %v168_v12 = vpop.permute.xlu2 %167  ;;  %v627_v19 = vsel %vm115_vm0, 1.0, %v934_v38 }
  0xb2   :  { %v238_v2 = vadd.f32 %v642_v61, %v210_v62  ;;  %v127_v24 = vadd.f32 %v627_v19, %v623_v23  ;;  %vm172_vm8 = vcmp.eq.s32.totalorder %v168_v12, %v994_v35 }
  0xb3   :  { %v636_v43 = vsel %vm172_vm8, 1.0, %v934_v38 }
  0xb4   :  { %v155_v36 = vadd.f32 %v631_v27, %v127_v24 }
  0xb8   :  { %v246_v0 = vpop.permute.xlu1 %245  ;;  %v221_v33 = vpop.permute.xlu0 %220 }
  0xb9   :  { %vm254_vm15 = vcmp.eq.s32.totalorder %v246_v0, %v994_v35  ;;  %vm227_vm9 = vcmp.eq.s32.totalorder %v221_v33, %v994_v35  ;;  %v769_v0 = vld [vmem:[#allocation6 + $0x10] sm:$0xff] }
  0xba   :  { %v646_v5 = vsel %vm254_vm15, 1.0, %v934_v38  ;;  %v196_v16 = vpop.permute.xlu2 %195  ;;  %v643_v45 = vsel %vm227_vm9, 1.0, %v934_v38  ;;  %571 = vmatpush.bf16.msra.mxu2 %v769_v0 }
  0xbb   :  { %v266_v7 = vadd.f32 %v646_v5, %v238_v2  ;;  %vm200_vm10 = vcmp.eq.s32.totalorder %v196_v16, %v994_v35  ;;  %v768_v2 = vld [vmem:[#allocation6 + $0x8] sm:$0xff]  ;;  %v775_v5 = vld [vmem:[#allocation6 + $0x40] sm:$0xff] }
  0xbc   :  { %v640_v47 = vsel %vm200_vm10, 1.0, %v934_v38 }
  0xbd   :  { %v294_v9 = vadd.f32 %v650_v3, %v266_v7  ;;  %v777_v3 = vld [vmem:[#allocation6 + $0x50] sm:$0xff] }
  0xbe   :  { %572 = vmatpush.bf16.msra.mxu2 %v768_v2  ;;  %504 = vmatpush.bf16.msra.mxu1 %v777_v3 }
  0xbf   :  { %v301_v10 = vpack.c.bf16 %v294_v9, %v293_v8  ;;  %v766_v9 = vld [vmem:[%s1083_s1 + $0x8] sm:$0xff] }
  0xc1   :  { %v140_v11 = vpop.permute.xlu1 %139  ;;  %375 = vmatmul.bf16.vlgmr.msra.gmra.mxu0 %v301_v10 }
  0xc2   :  { %vm144_vm5 = vcmp.eq.s32.totalorder %v140_v11, %v994_v35  ;;  %v280_v49 = vpop.permute.xlu0 %279  ;;  %505 = vmatpush.bf16.msra.mxu1 %v776_v4 }
  0xc3   :  { %v249_v28 = vpop.permute.xlu2 %248  ;;  %v632_v31 = vsel %vm144_vm5, 1.0, %v934_v38  ;;  %vm284_vm14 = vcmp.eq.s32.totalorder %v280_v49, %v994_v35 }
  0xc4   :  { %v156_v39 = vadd.f32 %v632_v31, %v128_v34  ;;  %vm255_vm11 = vcmp.eq.s32.totalorder %v249_v28, %v994_v35  ;;  %v652_v59 = vsel %vm284_vm14, 1.0, %v934_v38 }
  0xc5   :  { %v647_v51 = vsel %vm255_vm11, 1.0, %v934_v38 }
  0xc6   :  { %v184_v46 = vadd.f32 %v636_v43, %v156_v39  ;;  %506 = vmatpush.bf16.msra.mxu1 %v775_v5 }
  0xc8   :  { %v212_v53 = vadd.f32 %v640_v47, %v184_v46 }
  0xca   :  { %v165_v13 = vpop.permute.xlu1 %164 }
  0xcb   :  { %vm171_vm6 = vcmp.eq.s32.totalorder %v165_v13, %v994_v35 }
  0xcc   :  { %v635_v32 = vsel %vm171_vm6, 1.0, %v934_v38  ;;  %v277_v48 = vpop.permute.xlu2 %276 }
  0xcd   :  { %v183_v40 = vadd.f32 %v635_v32, %v155_v36  ;;  %vm283_vm13 = vcmp.eq.s32.totalorder %v277_v48, %v994_v35 }
  0xce   :  { %v651_v57 = vsel %vm283_vm13, 1.0, %v934_v38 }
  0xd3   :  { %v193_v20 = vpop.permute.xlu1 %192 }
  0xd4   :  { %vm199_vm7 = vcmp.eq.s32.totalorder %v193_v20, %v994_v35 }
  0xd5   :  { %v639_v37 = vsel %vm199_vm7, 1.0, %v934_v38 }
  0xd6   :  { %v211_v44 = vadd.f32 %v639_v37, %v183_v40 }
  0xd8   :  { %v239_v50 = vadd.f32 %v643_v45, %v211_v44 }
  0xda   :  { %v267_v55 = vadd.f32 %v647_v51, %v239_v50 }
  0xdc   :  { %v224_v41 = vpop.permute.xlu1 %223  ;;  %v295_v61 = vadd.f32 %v651_v57, %v267_v55 }
  0xdd   :  { %vm228_vm12 = vcmp.eq.s32.totalorder %v224_v41, %v994_v35 }
  0xde   :  { %v644_v52 = vsel %vm228_vm12, 1.0, %v934_v38 }
  0xdf   :  { %v240_v56 = vadd.f32 %v644_v52, %v212_v53 }
  0xe5   :  { %v252_v54 = vpop.permute.xlu1 %251 }
  0xe6   :  { %vm256_vm15 = vcmp.eq.s32.totalorder %v252_v54, %v994_v35  ;;  %v767_v35 = vld [vmem:[#allocation6] sm:$0xff] }
  0xe7   :  { %v648_v58 = vsel %vm256_vm15, 1.0, %v934_v38  ;;  %573 = vmatpush.bf16.msra.mxu2 %v767_v35  ;;  %v765_v38 = vld [vmem:[%s1083_s1] sm:$0xff]  ;;  %s935_s1 = smov [#allocation8]  }
  0xe8   :  { %v268_v60 = vadd.f32 %v648_v58, %v240_v56  ;;  %507 = vmatmul.bf16.vlgmr.msra.gmra.mxu1 %v765_v38  ;;  %s605_s4 = sshll.u32 %s935_s1, 4  ;;  %s606_s4 = int_to_ptr.vmem [resolvable:$true] %s605_s4 }
  0xea   :  { %v296_v62 = vadd.f32 %v652_v59, %v268_v60 }
  0xec   :  { %v302_v63 = vpack.c.bf16 %v296_v62, %v295_v61 }
  0xee   :  { %380 = vmatmul.bf16.vlgmr.msra.gmra.mxu3 %v302_v63 }
  0xf8   :  { %512 = vmatmul.bf16.gmra.mxu1 %v766_v9 }
 0x13e   :  { %v376_v6 = vpop.f32.mrf.mxu0 }
 0x146   :  { %v378_v7 = vpop.f32.mrf.mxu0 }
 0x147   :  { %v405_v8 = vpack.c.bf16 %v378_v7, %v376_v6 }
 0x149   :  { %574 = vmatmul.bf16.vlgmr.msra.gmra.mxu2 %v405_v8 }
 0x165   :  { %v508_v13 = vpop.f32.mrf.mxu1 }
 0x16d   :  { %v510_v18 = vpop.f32.mrf.mxu1 }
 0x171   :  { %v381_v10 = vpop.f32.mrf.mxu3 }
 0x175   :  { %v513_v24 = vpop.f32.mrf.mxu1 }
 0x179   :  { %v383_v11 = vpop.f32.mrf.mxu3 }
 0x17a   :  { %v406_v12 = vpack.c.bf16 %v383_v11, %v381_v10 }
 0x17c   :  { %579 = vmatmul.bf16.gmra.mxu2 %v406_v12 }
 0x17d   :  { %v515_v28 = vpop.f32.mrf.mxu1 }
 0x1cc   :  { %v575_v15 = vpop.f32.mrf.mxu2 }
 0x1cd   :  { %v576_v16 = vadd.f32 %v575_v15, %v508_v13 }
 0x1cf   :  { %v589_v17 = vadd.f32 %v835_v14, %v576_v16 }
 0x1d1   :  { %836 = vtanh.f32 %v589_v17 }
 0x1d4   :  { %v577_v19 = vpop.f32.mrf.mxu2 }
 0x1d5   :  { %v578_v20 = vadd.f32 %v577_v19, %v510_v18 }
 0x1d7   :  { %v837_v21 = vpop.eup %836  ;;  %v590_v22 = vadd.f32 %v835_v14, %v578_v20 }
 0x1d8   :  { %597 = vst [vmem:[#allocation8] sm:$0xff] %v837_v21 }
 0x1d9   :  { %838 = vtanh.f32 %v590_v22 }
 0x1df   :  { %v839_v23 = vpop.eup %838 }
 0x1e0   :  { %598 = vst [vmem:[#allocation8 + $0x8] sm:$0xff] %v839_v23 }
 0x1ff   :  { %v580_v25 = vpop.f32.mrf.mxu2 }
 0x200   :  { %v581_v26 = vadd.f32 %v580_v25, %v513_v24 }
 0x202   :  { %v591_v27 = vadd.f32 %v835_v14, %v581_v26 }
 0x204   :  { %840 = vtanh.f32 %v591_v27 }
 0x207   :  { %v582_v29 = vpop.f32.mrf.mxu2 }
 0x208   :  { %v583_v30 = vadd.f32 %v582_v29, %v515_v28 }
 0x20a   :  { %v841_v31 = vpop.eup %840  ;;  %v592_v32 = vadd.f32 %v835_v14, %v583_v30 }
 0x20b   :  { %599 = vst [vmem:[#allocation8 + $0x10] sm:$0xff] %v841_v31 }
 0x20c   :  { %842 = vtanh.f32 %v592_v32 }
 0x212   :  { %v843_v33 = vpop.eup %842 }
 0x213   :  { %600 = vst [vmem:[#allocation8 + $0x18] sm:$0xff] %v843_v33 }
 0x214   :  { %613 = dma.vmem_to_hbm [thread:$0]  %s606_s4, 512, %s608_s18, [#allocation5], %s936_s19, %s936_s19, %s937_s20  }
 0x215   :  { %920 = dma.done.wait [#allocation5], 512  }
 0x216   :  { %921 = vsyncadd [#allocation5], 4294966784 }
 0x217   :  { %618 = vsyncpa [#allocation4], 1 }
 0x218   :  { %619 = vsyncpa [#allocation7], 1 }
 0x219   :  { %620 = vsyncpa [#allocation5], 1 }

// kernel: tpu_custom_call.1
= control target key start
LH: loop header
LB: loop body
LE: loop exit
PB: predicated region body
PF: predicated region fallthrough
CT: control target
= control target key end

     0   :  { %10 = vsyncpa [#allocation4], 0  ;;  %s1082_s0 = inlined_call_operand.vmem [shape: s32[32,8], index: 0, kind: input, shape index: {}]   ;;  %s1083_s1 = inlined_call_operand.vmem [shape: bf16[32,128], index: 1, kind: input, shape index: {}]   ;;  %s1084_s2 = inlined_call_operand.hbm [shape: bf16[128,128], index: 2, kind: input, shape index: {}]   ;;  %s1085_s3 = inlined_call_operand.hbm [shape: bf16[256,128], index: 3, kind: input, shape index: {}]   ;;  %s1086_s4 = inlined_call_operand.vmem [shape: f32[1,128], index: 4, kind: input, shape index: {}]   ;;  %s1087_s5 = inlined_call_operand.hbm [shape: f32[32,128], index: 5, kind: output, shape index: {}]  }
   0x1   :  { %11 = vsyncpa [#allocation7], 0 }
   0x2   :  { %12 = vsyncpa [#allocation5], 0  ;;  %s21_s20 = sshll.u32 %s1084_s2, 4  ;;  %s922_s21 = smov [#allocation3]   ;;  %s22_s20 = int_to_ptr.hbm [resolvable:$true] %s21_s20 }
   0x3   :  { %s23_s22 = sshll.u32 %s922_s21, 4  ;;  %s34_s25 = sshll.u32 %s1085_s3, 4  ;;  %s24_s22 = int_to_ptr.vmem [resolvable:$true] %s23_s22  ;;  %s35_s25 = int_to_ptr.hbm [resolvable:$true] %s34_s25 }
   0x4   :  { %s923_s26 = smov 64   ;;  %s924_s27 = smov 4  }
   0x5   :  { %29 = dma.hbm_to_vmem [thread:$0]  %s22_s20, 1024, %s24_s22, [#allocation4], %s923_s26, %s923_s26, %s924_s27  }
   0x6   :  { %s925_s28 = smov [#allocation6]  }
   0x7   :  { %s36_s29 = sshll.u32 %s925_s28, 4  ;;  %s37_s29 = int_to_ptr.vmem [resolvable:$true] %s36_s29 }
   0x8   :  { %42 = dma.hbm_to_vmem [thread:$0]  %s35_s25, 2048, %s37_s29, [#allocation7], %s923_s26, %s923_s26, %s924_s27  }
   0x9   :  { %916 = dma.done.wait [#allocation4], 1024  }
   0xa   :  { %917 = vsyncadd [#allocation4], 4294966272 }
   0xb   :  { %918 = dma.done.wait [#allocation7], 2048  }
   0xc   :  { %919 = vsyncadd [#allocation7], 4294965248  ;;  %v926_v0 = vmov 2   ;;  %v927_v1 = vmov 1   ;;  %v928_v2 = vmov 0   ;;  %v61_v3 = vld [vmem:[%s1082_s0] sm:$0xff]  ;;  %v71_v32 = vlaneseq }
   0xd   :  { %809 = vset.pattern.permute.xlu2 %v926_v0  ;;  %808 = vset.pattern.permute.xlu1 %v927_v1  ;;  %v62_v4 = vld [vmem:[%s1082_s0 + $0x8] sm:$0xff]  ;;  %v929_v5 = vmov 4   ;;  %v930_v6 = vmov 3   ;;  %v931_v7 = vmov 5   ;;  %v932_v8 = vmov 6   ;;  %v64_v9 = vld [vmem:[%s1082_s0 + $0x18] sm:$0xff] }
   0xe   :  { %807 = vset.pattern.permute.xlu0 %v928_v2  ;;  %130 = vperm.xlu2 %809, %v61_v3   ;;  %v63_v10 = vld [vmem:[%s1082_s0 + $0x10] sm:$0xff]  ;;  %v933_v11 = vmov 7   ;;  %v764_v15 = vld [vmem:[#allocation3 + $0x38] sm:$0xff]  ;;  %v762_v20 = vld [vmem:[#allocation3 + $0x28] sm:$0xff]  ;;  %v994_v35 = vand.u32 127, %v71_v32  ;;  %v934_v38 = vmov 0.0  }
   0xf   :  { %102 = vperm.xlu1 %808, %v61_v3   ;;  %74 = vperm.xlu0 %807, %v61_v3   ;;  %v763_v18 = vld [vmem:[#allocation3 + $0x30] sm:$0xff]  ;;  %v761_v23 = vld [vmem:[#allocation3 + $0x20] sm:$0xff]  ;;  %v760_v24 = vld [vmem:[#allocation3 + $0x18] sm:$0xff]  ;;  %s607_s18 = sshll.u32 %s1087_s5, 4  ;;  %s936_s19 = smov 128   ;;  %s608_s18 = int_to_ptr.hbm [resolvable:$true] %s607_s18 }
  0x10   :  { %367 = vmatpush.bf16.msra.mxu0 %v764_v15  ;;  %783 = vmatpush.bf16.msra.mxu3 %v764_v15  ;;  %v759_v26 = vld [vmem:[#allocation3 + $0x10] sm:$0xff]  ;;  %v758_v29 = vld [vmem:[#allocation3 + $0x8] sm:$0xff]  ;;  %v757_v30 = vld [vmem:[#allocation3] sm:$0xff]  ;;  %s937_s20 = smov 8  }
  0x11   :  { %v782_v15 = vld [vmem:[#allocation6 + $0x78] sm:$0xff] }
  0x12   :  { %499 = vmatpush.bf16.msra.mxu1 %v782_v15 }
  0x14   :  { %368 = vmatpush.bf16.msra.mxu0 %v763_v18  ;;  %784 = vmatpush.bf16.msra.mxu3 %v763_v18  ;;  %v781_v18 = vld [vmem:[#allocation6 + $0x70] sm:$0xff] }
  0x16   :  { %133 = vperm.xlu2 %809, %v62_v4   ;;  %500 = vmatpush.bf16.msra.mxu1 %v781_v18 }
  0x17   :  { %105 = vperm.xlu1 %808, %v62_v4   ;;  %77 = vperm.xlu0 %807, %v62_v4  }
  0x18   :  { %369 = vmatpush.bf16.msra.mxu0 %v762_v20  ;;  %785 = vmatpush.bf16.msra.mxu3 %v762_v20 }
  0x1c   :  { %370 = vmatpush.bf16.msra.mxu0 %v761_v23  ;;  %786 = vmatpush.bf16.msra.mxu3 %v761_v23 }
  0x1e   :  { %812 = vset.pattern.permute.xlu2 %v929_v5 }
  0x1f   :  { %811 = vset.pattern.permute.xlu1 %v930_v6  ;;  %810 = vset.pattern.permute.xlu0 %v930_v6 }
  0x20   :  { %186 = vperm.xlu2 %812, %v61_v3   ;;  %161 = vperm.xlu1 %811, %v62_v4  }
  0x21   :  { %158 = vperm.xlu0 %810, %v61_v3   ;;  %371 = vmatpush.bf16.msra.mxu0 %v760_v24 }
  0x22   :  { %787 = vmatpush.bf16.msra.mxu3 %v760_v24 }
  0x25   :  { %372 = vmatpush.bf16.msra.mxu0 %v759_v26 }
  0x26   :  { %788 = vmatpush.bf16.msra.mxu3 %v759_v26 }
  0x28   :  { %814 = vset.pattern.permute.xlu2 %v931_v7  ;;  %813 = vset.pattern.permute.xlu1 %v929_v5 }
  0x29   :  { %819 = vset.pattern.permute.xlu0 %v932_v8  ;;  %214 = vperm.xlu2 %814, %v61_v3  }
  0x2a   :  { %189 = vperm.xlu1 %813, %v62_v4   ;;  %242 = vperm.xlu0 %819, %v61_v3  }
  0x2b   :  { %373 = vmatpush.bf16.msra.mxu0 %v758_v29  ;;  %789 = vmatpush.bf16.msra.mxu3 %v758_v29  ;;  %v771_v29 = vld [vmem:[#allocation6 + $0x20] sm:$0xff] }
  0x2f   :  { %374 = vmatpush.bf16.msra.mxu0 %v757_v30  ;;  %790 = vmatpush.bf16.msra.mxu3 %v757_v30  ;;  %v779_v30 = vld [vmem:[#allocation6 + $0x60] sm:$0xff] }
  0x31   :  { %816 = vset.pattern.permute.xlu2 %v928_v2 }
  0x32   :  { %815 = vset.pattern.permute.xlu1 %v928_v2  ;;  %824 = vset.pattern.permute.xlu0 %v933_v11 }
  0x33   :  { %83 = vperm.xlu2 %816, %v64_v9   ;;  %80 = vperm.xlu1 %815, %v63_v10  }
  0x34   :  { %273 = vperm.xlu0 %824, %v62_v4  }
  0x3b   :  { %818 = vset.pattern.permute.xlu2 %v927_v1  ;;  %817 = vset.pattern.permute.xlu1 %v927_v1 }
  0x3c   :  { %825 = vset.pattern.permute.xlu0 %v931_v7  ;;  %111 = vperm.xlu2 %818, %v64_v9  }
  0x3d   :  { %108 = vperm.xlu1 %817, %v63_v10   ;;  %217 = vperm.xlu0 %825, %v62_v4  }
  0x44   :  { %821 = vset.pattern.permute.xlu2 %v926_v0 }
  0x45   :  { %820 = vset.pattern.permute.xlu1 %v932_v8  ;;  %136 = vperm.xlu2 %821, %v63_v10  }
  0x46   :  { %245 = vperm.xlu1 %820, %v62_v4   ;;  %220 = vperm.xlu0 %825, %v63_v10  }
  0x4d   :  { %823 = vset.pattern.permute.xlu2 %v933_v11 }
  0x4e   :  { %822 = vset.pattern.permute.xlu1 %v926_v0  ;;  %270 = vperm.xlu2 %823, %v61_v3  }
  0x4f   :  { %139 = vperm.xlu1 %822, %v64_v9   ;;  %834 = vset.pattern.permute.xlu0 %v933_v11 }
  0x50   :  { %279 = vperm.xlu0 %834, %v64_v9  }
  0x56   :  { %827 = vset.pattern.permute.xlu2 %v930_v6 }
  0x57   :  { %826 = vset.pattern.permute.xlu1 %v930_v6  ;;  %167 = vperm.xlu2 %827, %v64_v9  }
  0x58   :  { %164 = vperm.xlu1 %826, %v63_v10  }
  0x5f   :  { %829 = vset.pattern.permute.xlu2 %v929_v5 }
  0x60   :  { %828 = vset.pattern.permute.xlu1 %v929_v5  ;;  %195 = vperm.xlu2 %829, %v64_v9  }
  0x61   :  { %192 = vperm.xlu1 %828, %v63_v10  }
  0x68   :  { %831 = vset.pattern.permute.xlu2 %v932_v8  ;;  %v131_v12 = vpop.permute.xlu2 %130 }
  0x69   :  { %830 = vset.pattern.permute.xlu1 %v931_v7  ;;  %248 = vperm.xlu2 %831, %v63_v10   ;;  %vm141_vm2 = vcmp.eq.s32.totalorder %v131_v12, %v994_v35 }
  0x6a   :  { %223 = vperm.xlu1 %830, %v64_v9   ;;  %v629_v43 = vsel %vm141_vm2, 1.0, %v934_v38 }
  0x70   :  { %v986_v13 = vpop.permute.xlu2 %133 }
  0x71   :  { %833 = vset.pattern.permute.xlu2 %v933_v11  ;;  %vm142_vm6 = vcmp.eq.s32.totalorder %v986_v13, %v994_v35 }
  0x72   :  { %832 = vset.pattern.permute.xlu1 %v932_v8  ;;  %276 = vperm.xlu2 %833, %v63_v10   ;;  %v630_v52 = vsel %vm142_vm6, 1.0, %v934_v38 }
  0x73   :  { %251 = vperm.xlu1 %832, %v64_v9  }
  0x7a   :  { %v988_v16 = vpop.permute.xlu2 %186 }
  0x7b   :  { %vm197_vm7 = vcmp.eq.s32.totalorder %v988_v16, %v994_v35 }
  0x7c   :  { %v637_v53 = vsel %vm197_vm7, 1.0, %v934_v38 }
  0x81   :  { %v103_v14 = vpop.permute.xlu1 %102  ;;  %v75_v17 = vpop.permute.xlu0 %74 }
  0x82   :  { %vm113_vm0 = vcmp.eq.s32.totalorder %v103_v14, %v994_v35  ;;  %vm85_vm1 = vcmp.eq.s32.totalorder %v75_v17, %v994_v35  ;;  %v774_v14 = vld [vmem:[#allocation6 + $0x38] sm:$0xff]  ;;  %v773_v17 = vld [vmem:[#allocation6 + $0x30] sm:$0xff] }
  0x83   :  { %v215_v22 = vpop.permute.xlu2 %214  ;;  %v625_v39 = vsel %vm113_vm0, 1.0, %v934_v38  ;;  %v621_v40 = vsel %vm85_vm1, 1.0, %v934_v38  ;;  %566 = vmatpush.bf16.msra.mxu2 %v774_v14  ;;  %v835_v14 = vld [vmem:[%s1086_s4] ss:$0 sm:$0xff] }
  0x84   :  { %v125_v42 = vadd.f32 %v625_v39, %v621_v40  ;;  %vm225_vm10 = vcmp.eq.s32.totalorder %v215_v22, %v994_v35  ;;  %v780_v22 = vld [vmem:[#allocation6 + $0x68] sm:$0xff] }
  0x85   :  { %v641_v60 = vsel %vm225_vm10, 1.0, %v934_v38  ;;  %501 = vmatpush.bf16.msra.mxu1 %v780_v22 }
  0x86   :  { %v153_v48 = vadd.f32 %v629_v43, %v125_v42  ;;  %v770_v42 = vld [vmem:[#allocation6 + $0x18] sm:$0xff] }
  0x87   :  { %567 = vmatpush.bf16.msra.mxu2 %v773_v17 }
  0x89   :  { %v106_v19 = vpop.permute.xlu1 %105  ;;  %v78_v21 = vpop.permute.xlu0 %77  ;;  %502 = vmatpush.bf16.msra.mxu1 %v779_v30 }
  0x8a   :  { %vm114_vm3 = vcmp.eq.s32.totalorder %v106_v19, %v994_v35  ;;  %vm86_vm4 = vcmp.eq.s32.totalorder %v78_v21, %v994_v35  ;;  %v772_v21 = vld [vmem:[#allocation6 + $0x28] sm:$0xff] }
  0x8b   :  { %v626_v44 = vsel %vm114_vm3, 1.0, %v934_v38  ;;  %v622_v45 = vsel %vm86_vm4, 1.0, %v934_v38  ;;  %568 = vmatpush.bf16.msra.mxu2 %v772_v21 }
  0x8c   :  { %v126_v47 = vadd.f32 %v626_v44, %v622_v45 }
  0x8d   :  { %v990_v28 = vpop.permute.xlu2 %83 }
  0x8e   :  { %v154_v55 = vadd.f32 %v630_v52, %v126_v47  ;;  %vm88_vm2 = vcmp.eq.s32.totalorder %v990_v28, %v994_v35 }
  0x8f   :  { %569 = vmatpush.bf16.msra.mxu2 %v771_v29 }
  0x92   :  { %v162_v25 = vpop.permute.xlu1 %161 }
  0x93   :  { %v159_v27 = vpop.permute.xlu0 %158  ;;  %vm170_vm8 = vcmp.eq.s32.totalorder %v162_v25, %v994_v35  ;;  %v624_v25 = vsel %vm88_vm2, 1.0, %v934_v38  ;;  %570 = vmatpush.bf16.msra.mxu2 %v770_v42 }
  0x94   :  { %vm169_vm5 = vcmp.eq.s32.totalorder %v159_v27, %v994_v35  ;;  %v634_v54 = vsel %vm170_vm8, 1.0, %v934_v38 }
  0x95   :  { %v633_v46 = vsel %vm169_vm5, 1.0, %v934_v38  ;;  %v182_v58 = vadd.f32 %v634_v54, %v154_v55 }
  0x96   :  { %v992_v34 = vpop.permute.xlu2 %111  ;;  %v181_v51 = vadd.f32 %v633_v46, %v153_v48 }
  0x97   :  { %vm116_vm3 = vcmp.eq.s32.totalorder %v992_v34, %v994_v35 }
  0x98   :  { %v209_v59 = vadd.f32 %v637_v53, %v181_v51  ;;  %v628_v26 = vsel %vm116_vm3, 1.0, %v934_v38 }
  0x99   :  { %v128_v34 = vadd.f32 %v628_v26, %v624_v25 }
  0x9a   :  { %v237_v1 = vadd.f32 %v641_v60, %v209_v59 }
  0x9c   :  { %v190_v31 = vpop.permute.xlu1 %189  ;;  %v243_v33 = vpop.permute.xlu0 %242 }
  0x9d   :  { %vm198_vm9 = vcmp.eq.s32.totalorder %v190_v31, %v994_v35  ;;  %vm253_vm12 = vcmp.eq.s32.totalorder %v243_v33, %v994_v35 }
  0x9e   :  { %v638_v56 = vsel %vm198_vm9, 1.0, %v934_v38  ;;  %v645_v63 = vsel %vm253_vm12, 1.0, %v934_v38 }
  0x9f   :  { %v1005_v41 = vpop.permute.xlu2 %136  ;;  %v210_v62 = vadd.f32 %v638_v56, %v182_v58  ;;  %v265_v6 = vadd.f32 %v645_v63, %v237_v1  ;;  %v778_v1 = vld [vmem:[#allocation6 + $0x58] sm:$0xff] }
  0xa0   :  { %vm143_vm4 = vcmp.eq.s32.totalorder %v1005_v41, %v994_v35  ;;  %503 = vmatpush.bf16.msra.mxu1 %v778_v1 }
  0xa1   :  { %v631_v27 = vsel %vm143_vm4, 1.0, %v934_v38 }
  0xa5   :  { %v998_v36 = vpop.permute.xlu1 %80 }
  0xa6   :  { %v274_v37 = vpop.permute.xlu0 %273  ;;  %vm87_vm1 = vcmp.eq.s32.totalorder %v998_v36, %v994_v35 }
  0xa7   :  { %vm282_vm13 = vcmp.eq.s32.totalorder %v274_v37, %v994_v35  ;;  %v623_v23 = vsel %vm87_vm1, 1.0, %v934_v38 }
  0xa8   :  { %v271_v57 = vpop.permute.xlu2 %270  ;;  %v650_v3 = vsel %vm282_vm13, 1.0, %v934_v38 }
  0xa9   :  { %vm281_vm14 = vcmp.eq.s32.totalorder %v271_v57, %v994_v35 }
  0xaa   :  { %v649_v4 = vsel %vm281_vm14, 1.0, %v934_v38 }
  0xab   :  { %v293_v8 = vadd.f32 %v649_v4, %v265_v6  ;;  %v776_v4 = vld [vmem:[#allocation6 + $0x48] sm:$0xff] }
  0xaf   :  { %v109_v49 = vpop.permute.xlu1 %108  ;;  %v218_v50 = vpop.permute.xlu0 %217 }
  0xb0   :  { %vm226_vm11 = vcmp.eq.s32.totalorder %v218_v50, %v994_v35  ;;  %vm115_vm0 = vcmp.eq.s32.totalorder %v109_v49, %v994_v35 }
  0xb1   :  { %v642_v61 = vsel %vm226_vm11, 1.0, %v934_v38  ;;  %v168_v12 = vpop.permute.xlu2 %167  ;;  %v627_v19 = vsel %vm115_vm0, 1.0, %v934_v38 }
  0xb2   :  { %v238_v2 = vadd.f32 %v642_v61, %v210_v62  ;;  %v127_v24 = vadd.f32 %v627_v19, %v623_v23  ;;  %vm172_vm8 = vcmp.eq.s32.totalorder %v168_v12, %v994_v35 }
  0xb3   :  { %v636_v43 = vsel %vm172_vm8, 1.0, %v934_v38 }
  0xb4   :  { %v155_v36 = vadd.f32 %v631_v27, %v127_v24 }
  0xb8   :  { %v246_v0 = vpop.permute.xlu1 %245  ;;  %v221_v33 = vpop.permute.xlu0 %220 }
  0xb9   :  { %vm254_vm15 = vcmp.eq.s32.totalorder %v246_v0, %v994_v35  ;;  %vm227_vm9 = vcmp.eq.s32.totalorder %v221_v33, %v994_v35  ;;  %v769_v0 = vld [vmem:[#allocation6 + $0x10] sm:$0xff] }
  0xba   :  { %v646_v5 = vsel %vm254_vm15, 1.0, %v934_v38  ;;  %v196_v16 = vpop.permute.xlu2 %195  ;;  %v643_v45 = vsel %vm227_vm9, 1.0, %v934_v38  ;;  %571 = vmatpush.bf16.msra.mxu2 %v769_v0 }
  0xbb   :  { %v266_v7 = vadd.f32 %v646_v5, %v238_v2  ;;  %vm200_vm10 = vcmp.eq.s32.totalorder %v196_v16, %v994_v35  ;;  %v768_v2 = vld [vmem:[#allocation6 + $0x8] sm:$0xff]  ;;  %v775_v5 = vld [vmem:[#allocation6 + $0x40] sm:$0xff] }
  0xbc   :  { %v640_v47 = vsel %vm200_vm10, 1.0, %v934_v38 }
  0xbd   :  { %v294_v9 = vadd.f32 %v650_v3, %v266_v7  ;;  %v777_v3 = vld [vmem:[#allocation6 + $0x50] sm:$0xff] }
  0xbe   :  { %572 = vmatpush.bf16.msra.mxu2 %v768_v2  ;;  %504 = vmatpush.bf16.msra.mxu1 %v777_v3 }
  0xbf   :  { %v301_v10 = vpack.c.bf16 %v294_v9, %v293_v8  ;;  %v766_v9 = vld [vmem:[%s1083_s1 + $0x8] sm:$0xff] }
  0xc1   :  { %v140_v11 = vpop.permute.xlu1 %139  ;;  %375 = vmatmul.bf16.vlgmr.msra.gmra.mxu0 %v301_v10 }
  0xc2   :  { %vm144_vm5 = vcmp.eq.s32.totalorder %v140_v11, %v994_v35  ;;  %v280_v49 = vpop.permute.xlu0 %279  ;;  %505 = vmatpush.bf16.msra.mxu1 %v776_v4 }
  0xc3   :  { %v249_v28 = vpop.permute.xlu2 %248  ;;  %v632_v31 = vsel %vm144_vm5, 1.0, %v934_v38  ;;  %vm284_vm14 = vcmp.eq.s32.totalorder %v280_v49, %v994_v35 }
  0xc4   :  { %v156_v39 = vadd.f32 %v632_v31, %v128_v34  ;;  %vm255_vm11 = vcmp.eq.s32.totalorder %v249_v28, %v994_v35  ;;  %v652_v59 = vsel %vm284_vm14, 1.0, %v934_v38 }
  0xc5   :  { %v647_v51 = vsel %vm255_vm11, 1.0, %v934_v38 }
  0xc6   :  { %v184_v46 = vadd.f32 %v636_v43, %v156_v39  ;;  %506 = vmatpush.bf16.msra.mxu1 %v775_v5 }
  0xc8   :  { %v212_v53 = vadd.f32 %v640_v47, %v184_v46 }
  0xca   :  { %v165_v13 = vpop.permute.xlu1 %164 }
  0xcb   :  { %vm171_vm6 = vcmp.eq.s32.totalorder %v165_v13, %v994_v35 }
  0xcc   :  { %v635_v32 = vsel %vm171_vm6, 1.0, %v934_v38  ;;  %v277_v48 = vpop.permute.xlu2 %276 }
  0xcd   :  { %v183_v40 = vadd.f32 %v635_v32, %v155_v36  ;;  %vm283_vm13 = vcmp.eq.s32.totalorder %v277_v48, %v994_v35 }
  0xce   :  { %v651_v57 = vsel %vm283_vm13, 1.0, %v934_v38 }
  0xd3   :  { %v193_v20 = vpop.permute.xlu1 %192 }
  0xd4   :  { %vm199_vm7 = vcmp.eq.s32.totalorder %v193_v20, %v994_v35 }
  0xd5   :  { %v639_v37 = vsel %vm199_vm7, 1.0, %v934_v38 }
  0xd6   :  { %v211_v44 = vadd.f32 %v639_v37, %v183_v40 }
  0xd8   :  { %v239_v50 = vadd.f32 %v643_v45, %v211_v44 }
  0xda   :  { %v267_v55 = vadd.f32 %v647_v51, %v239_v50 }
  0xdc   :  { %v224_v41 = vpop.permute.xlu1 %223  ;;  %v295_v61 = vadd.f32 %v651_v57, %v267_v55 }
  0xdd   :  { %vm228_vm12 = vcmp.eq.s32.totalorder %v224_v41, %v994_v35 }
  0xde   :  { %v644_v52 = vsel %vm228_vm12, 1.0, %v934_v38 }
  0xdf   :  { %v240_v56 = vadd.f32 %v644_v52, %v212_v53 }
  0xe5   :  { %v252_v54 = vpop.permute.xlu1 %251 }
  0xe6   :  { %vm256_vm15 = vcmp.eq.s32.totalorder %v252_v54, %v994_v35  ;;  %v767_v35 = vld [vmem:[#allocation6] sm:$0xff] }
  0xe7   :  { %v648_v58 = vsel %vm256_vm15, 1.0, %v934_v38  ;;  %573 = vmatpush.bf16.msra.mxu2 %v767_v35  ;;  %v765_v38 = vld [vmem:[%s1083_s1] sm:$0xff]  ;;  %s935_s1 = smov [#allocation8]  }
  0xe8   :  { %v268_v60 = vadd.f32 %v648_v58, %v240_v56  ;;  %507 = vmatmul.bf16.vlgmr.msra.gmra.mxu1 %v765_v38  ;;  %s605_s4 = sshll.u32 %s935_s1, 4  ;;  %s606_s4 = int_to_ptr.vmem [resolvable:$true] %s605_s4 }
  0xea   :  { %v296_v62 = vadd.f32 %v652_v59, %v268_v60 }
  0xec   :  { %v302_v63 = vpack.c.bf16 %v296_v62, %v295_v61 }
  0xee   :  { %380 = vmatmul.bf16.vlgmr.msra.gmra.mxu3 %v302_v63 }
  0xf8   :  { %512 = vmatmul.bf16.gmra.mxu1 %v766_v9 }
 0x13e   :  { %v376_v6 = vpop.f32.mrf.mxu0 }
 0x146   :  { %v378_v7 = vpop.f32.mrf.mxu0 }
 0x147   :  { %v405_v8 = vpack.c.bf16 %v378_v7, %v376_v6 }
 0x149   :  { %574 = vmatmul.bf16.vlgmr.msra.gmra.mxu2 %v405_v8 }
 0x165   :  { %v508_v13 = vpop.f32.mrf.mxu1 }
 0x16d   :  { %v510_v18 = vpop.f32.mrf.mxu1 }
 0x171   :  { %v381_v10 = vpop.f32.mrf.mxu3 }
 0x175   :  { %v513_v24 = vpop.f32.mrf.mxu1 }
 0x179   :  { %v383_v11 = vpop.f32.mrf.mxu3 }
 0x17a   :  { %v406_v12 = vpack.c.bf16 %v383_v11, %v381_v10 }
 0x17c   :  { %579 = vmatmul.bf16.gmra.mxu2 %v406_v12 }
 0x17d   :  { %v515_v28 = vpop.f32.mrf.mxu1 }
 0x1cc   :  { %v575_v15 = vpop.f32.mrf.mxu2 }
 0x1cd   :  { %v576_v16 = vadd.f32 %v575_v15, %v508_v13 }
 0x1cf   :  { %v589_v17 = vadd.f32 %v835_v14, %v576_v16 }
 0x1d1   :  { %836 = vtanh.f32 %v589_v17 }
 0x1d4   :  { %v577_v19 = vpop.f32.mrf.mxu2 }
 0x1d5   :  { %v578_v20 = vadd.f32 %v577_v19, %v510_v18 }
 0x1d7   :  { %v837_v21 = vpop.eup %836  ;;  %v590_v22 = vadd.f32 %v835_v14, %v578_v20 }
 0x1d8   :  { %597 = vst [vmem:[#allocation8] sm:$0xff] %v837_v21 }
 0x1d9   :  { %838 = vtanh.f32 %v590_v22 }
 0x1df   :  { %v839_v23 = vpop.eup %838 }
 0x1e0   :  { %598 = vst [vmem:[#allocation8 + $0x8] sm:$0xff] %v839_v23 }
 0x1ff   :  { %v580_v25 = vpop.f32.mrf.mxu2 }
 0x200   :  { %v581_v26 = vadd.f32 %v580_v25, %v513_v24 }
 0x202   :  { %v591_v27 = vadd.f32 %v835_v14, %v581_v26 }
 0x204   :  { %840 = vtanh.f32 %v591_v27 }
 0x207   :  { %v582_v29 = vpop.f32.mrf.mxu2 }
 0x208   :  { %v583_v30 = vadd.f32 %v582_v29, %v515_v28 }
 0x20a   :  { %v841_v31 = vpop.eup %840  ;;  %v592_v32 = vadd.f32 %v835_v14, %v583_v30 }
 0x20b   :  { %599 = vst [vmem:[#allocation8 + $0x10] sm:$0xff] %v841_v31 }
 0x20c   :  { %842 = vtanh.f32 %v592_v32 }
 0x212   :  { %v843_v33 = vpop.eup %842 }
 0x213   :  { %600 = vst [vmem:[#allocation8 + $0x18] sm:$0xff] %v843_v33 }
 0x214   :  { %613 = dma.vmem_to_hbm [thread:$0]  %s606_s4, 512, %s608_s18, [#allocation5], %s936_s19, %s936_s19, %s937_s20  }
 0x215   :  { %920 = dma.done.wait [#allocation5], 512  }
 0x216   :  { %921 = vsyncadd [#allocation5], 4294966784 }
 0x217   :  { %618 = vsyncpa [#allocation4], 1 }
 0x218   :  { %619 = vsyncpa [#allocation7], 1 }
 0x219   :  { %620 = vsyncpa [#allocation5], 1 }

</bundles_post_ra>
